<compile_context>
chip_gen: v5e
topology: v5e:2x2
jax: 0.10.0
libtpu: 0.0.40
codegen_flags: <defaults>
</compile_context>

<pallas_src>
import functools

import numpy as np
import jax
import jax.numpy as jnp
from jax import lax
from jax.experimental import pallas as pl
from jax.experimental.pallas import tpu as pltpu

DIM_PERHEAD = 32          # mrla_module.dim_perhead
BN_EPS = 1e-5
VMEM_LIMIT = 32 * 1024 * 1024   # tiny usage here; keep <=48 MiB if scaled on v7x


# ---------------------------- Pallas kernel ----------------------------

def _zero_halo_border(pad_ref, H, W):
    """Zero only the 1-pixel halo border of a (H+2, W+2, C) scratch.

    The interior is fully overwritten every grid step, so per-step border
    zeroing is sufficient.  It is done every step (not under program_id==0)
    so the kernel stays correct when the 'parallel' batch axis is sharded
    across TensorCores (each core has its own scratch and may never run the
    first grid step)."""
    C = pad_ref.shape[2]
    z_row = jnp.zeros((1, W + 2, C), pad_ref.dtype)
    z_col = jnp.zeros((H + 2, 1, C), pad_ref.dtype)
    pad_ref[0:1, :, :] = z_row
    pad_ref[H + 1:H + 2, :, :] = z_row
    pad_ref[:, 0:1, :] = z_col
    pad_ref[:, W + 1:W + 2, :] = z_col


def _bottleneck_fused_kernel(x_ref, w1_ref, s1_ref, b1_ref,
                             w2_ref, s2_ref, b2_ref,
                             w3_ref, s3_ref, b3_ref,
                             aq_ref, ak_ref, hm_ref,
                             wv_ref, lam_ref, sm_ref, bm_ref,
                             out_ref,
                             pad2_ref, col_ref, pad3_ref, *, H, W):
    """Whole Bottleneck block for one batch element, pixels-as-rows (HW, C)."""
    HW = H * W
    Cin = pad2_ref.shape[2]          # planes
    C4 = pad3_ref.shape[2]           # planes * 4

    _zero_halo_border(pad2_ref, H, W)
    _zero_halo_border(pad3_ref, H, W)

    x = x_ref[0]                                              # (HW, C4) f32

    # ---- conv1 (1x1) + bn1 + relu  -> (HW, planes)
    h1 = jnp.dot(x.astype(jnp.bfloat16), w1_ref[...],
                 preferred_element_type=jnp.float32)
    h1 = jnp.maximum(h1 * s1_ref[...] + b1_ref[...], 0.0)

    # ---- conv2 (3x3, pad 1) as ONE im2col matmul with K = 9*planes
    pad2_ref[1:H + 1, 1:W + 1, :] = h1.reshape(H, W, Cin)
    for t in range(9):
        dy, dx = t // 3, t % 3
        col_ref[:, t * Cin:(t + 1) * Cin] = (
            pad2_ref[dy:dy + H, dx:dx + W, :]
            .reshape(HW, Cin).astype(jnp.bfloat16))
    h2 = jnp.dot(col_ref[...], w2_ref[...],
                 preferred_element_type=jnp.float32)
    h2 = jnp.maximum(h2 * s2_ref[...] + b2_ref[...], 0.0)     # (HW, planes)

    # ---- conv3 (1x1) + bn3 + residual + relu  -> (HW, C4)
    out = jnp.dot(h2.astype(jnp.bfloat16), w3_ref[...],
                  preferred_element_type=jnp.float32)
    out = jnp.maximum(out * s3_ref[...] + b3_ref[...] + x, 0.0)

    # ---- mrla attention scalars (avg-pool + Wq/Wk channel conv + per-head
    #      dot + sigmoid).  1/(H*W) is folded into aq/ak; 1/sqrt(dim_perhead)
    #      into the head-mask matrix hm.
    ysum = jnp.sum(out, axis=0, keepdims=True)                # (1, C4)
    q = jnp.dot(ysum, aq_ref[...], preferred_element_type=jnp.float32)
    k = jnp.dot(ysum, ak_ref[...], preferred_element_type=jnp.float32)
    attn = jax.nn.sigmoid(jnp.dot(q * k, hm_ref[...],
                                  preferred_element_type=jnp.float32))

    # ---- depthwise 3x3 Wv on `out` (f32 VPU taps)
    pad3_ref[1:H + 1, 1:W + 1, :] = out.reshape(H, W, C4)
    v = jnp.zeros((HW, C4), jnp.float32)
    for t in range(9):
        dy, dx = t // 3, t % 3
        v = v + (pad3_ref[dy:dy + H, dx:dx + W, :].reshape(HW, C4)
                 * wv_ref[t:t + 1, :])

    # ---- mrla residual + bn_mrla + final add
    mrla = v * attn + lam_ref[...] * x
    out_ref[0] = out + mrla * sm_ref[...] + bm_ref[...]


# ---------------------------- Pallas wrapper ----------------------------

def fused_bottleneck_block(x2, w1, s1, b1, w2col, s2, b2, w3, s3, b3,
                           aq, ak, hm, wv, lam, sm, bm, *, H, W):
    B, HW, C4 = x2.shape
    planes = w1.shape[1]
    kernel = functools.partial(_bottleneck_fused_kernel, H=H, W=W)

    def const(shape):
        return pl.BlockSpec(shape, lambda b: (0,) * len(shape))

    return pl.pallas_call(
        kernel,
        grid=(B,),
        out_shape=jax.ShapeDtypeStruct((B, HW, C4), jnp.float32),
        in_specs=[
            pl.BlockSpec((1, HW, C4), lambda b: (b, 0, 0)),   # x (residual)
            const((C4, planes)), const((1, planes)), const((1, planes)),
            const((9 * planes, planes)), const((1, planes)), const((1, planes)),
            const((planes, C4)), const((1, C4)), const((1, C4)),
            const((C4, C4)), const((C4, C4)), const((C4, C4)),
            const((9, C4)), const((1, C4)), const((1, C4)), const((1, C4)),
        ],
        out_specs=pl.BlockSpec((1, HW, C4), lambda b: (b, 0, 0)),
        scratch_shapes=[
            pltpu.VMEM((H + 2, W + 2, planes), jnp.float32),   # conv2 halo
            pltpu.VMEM((HW, 9 * planes), jnp.bfloat16),        # im2col slab
            pltpu.VMEM((H + 2, W + 2, C4), jnp.float32),       # Wv halo
        ],
        compiler_params=pltpu.CompilerParams(
            dimension_semantics=("parallel",),
            vmem_limit_bytes=VMEM_LIMIT),
    )(x2, w1, s1, b1, w2col, s2, b2, w3, s3, b3, aq, ak, hm, wv, lam, sm, bm)


# ---------------------------- Full forward ----------------------------

def _band_matrix(taps, C):
    """(C, C) matrix M s.t. y @ M == Conv1d(1,1,k,pad=(k-1)//2,bias=False)(y)."""
    k = taps.shape[0]
    pad = (k - 1) // 2
    d = jnp.arange(C)[:, None] - jnp.arange(C)[None, :]        # i - j
    m = jnp.zeros((C, C), jnp.float32)
    for t in range(k):
        m = m + jnp.where(d == (t - pad), taps[t], 0.0)
    return m


def bottleneck_forward(x_nchw, p):
    x = jnp.transpose(x_nchw, (0, 2, 3, 1)).astype(jnp.float32)   # NHWC
    B, H, W, C4 = x.shape
    planes = p['w1'].shape[1]
    assert C4 == planes * 4, "downsample is None -> inplanes must equal planes*4"
    HW = H * W

    # Weight-only (O(C^2)) host-side prep; no feature-map traffic.
    w1 = p['w1'].astype(jnp.bfloat16)
    w2col = p['w2'].reshape(9 * planes, planes).astype(jnp.bfloat16)
    w3 = p['w3'].astype(jnp.bfloat16)
    inv_hw = 1.0 / float(HW)
    aq = _band_matrix(p['wq'], C4) * inv_hw          # pool-normalization folded
    ak = _band_matrix(p['wk'], C4) * inv_hw
    head = jnp.arange(C4) // DIM_PERHEAD
    hm = ((head[:, None] == head[None, :]).astype(jnp.float32)
          / np.sqrt(DIM_PERHEAD))                    # per-head reduce+broadcast

    out2 = fused_bottleneck_block(
        x.reshape(B, HW, C4),
        w1, p['bn1_scale'].reshape(1, planes), p['bn1_bias'].reshape(1, planes),
        w2col, p['bn2_scale'].reshape(1, planes), p['bn2_bias'].reshape(1, planes),
        w3, p['bn3_scale'].reshape(1, C4), p['bn3_bias'].reshape(1, C4),
        aq, ak, hm,
        p['wv'], p['lam'].reshape(1, C4),
        p['bn_mrla_scale'].reshape(1, C4), p['bn_mrla_bias'].reshape(1, C4),
        H=H, W=W)

    out = out2.reshape(B, H, W, C4)
    return jnp.transpose(out, (0, 3, 1, 2))          # back to NCHW


# ---------------------------- Params + reference ----------------------------

def make_params(key, inplanes, planes):
    C4 = planes * 4
    assert inplanes == C4
    keys = iter(jax.random.split(key, 32))
    nrm = lambda shape, s=0.1: (jax.random.normal(next(keys), shape) * s).astype(jnp.float32)

    def bn_fold(c):
        gamma = jax.random.uniform(next(keys), (c,), minval=0.8, maxval=1.2)
        beta = nrm((c,))
        mean = nrm((c,))
        var = jax.random.uniform(next(keys), (c,), minval=0.5, maxval=1.5)
        scale = gamma / jnp.sqrt(var + BN_EPS)
        bias = beta - mean * scale
        return scale.astype(jnp.float32), bias.astype(jnp.float32)

    p = {}
    p['w1'] = nrm((inplanes, planes))            # conv1 1x1:  (Cin, planes)
    p['bn1_scale'], p['bn1_bias'] = bn_fold(planes)
    p['w2'] = nrm((9, planes, planes))           # conv2 3x3:  (tap, Cin, Cout)
    p['bn2_scale'], p['bn2_bias'] = bn_fold(planes)
    p['w3'] = nrm((planes, C4))                  # conv3 1x1:  (planes, C4)
    p['bn3_scale'], p['bn3_bias'] = bn_fold(C4)
    p['wq'] = nrm((3,), 0.5)                     # mrla Wq (k_size=3 for C4=64)
    p['wk'] = nrm((3,), 0.5)                     # mrla Wk
    p['wv'] = nrm((9, C4), 0.3)                  # mrla Wv depthwise 3x3: (tap, C)
    p['lam'] = nrm((C4,), 1.0)                   # lambda_t
    p['bn_mrla_scale'], p['bn_mrla_bias'] = bn_fold(C4)
    return p


def reference_forward(x_nchw, p):
    """Pure-JAX reference matching the PyTorch forward (eval-mode BN).

    MXU conv operands are quantized to bf16 with f32 accumulation, matching
    the kernel's intentional numerical contract.
    """
    x = jnp.transpose(x_nchw, (0, 2, 3, 1)).astype(jnp.float32)
    B, H, W, _ = x.shape
    planes = p['w1'].shape[1]
    C4 = planes * 4
    bf, f32 = jnp.bfloat16, jnp.float32
    hp = lax.Precision.HIGHEST

    def bn(v, s, b):
        return v * s + b

    out = jnp.einsum('bhwc,cd->bhwd', x.astype(bf), p['w1'].astype(bf),
                     preferred_element_type=f32)
    out = jnp.maximum(bn(out, p['bn1_scale'], p['bn1_bias']), 0.0)
    w2 = p['w2'].reshape(3, 3, planes, planes).astype(bf)
    out = lax.conv_general_dilated(out.astype(bf), w2, (1, 1), 'SAME',
                                   dimension_numbers=('NHWC', 'HWIO', 'NHWC'),
                                   preferred_element_type=f32)
    out = jnp.maximum(bn(out, p['bn2_scale'], p['bn2_bias']), 0.0)
    out = jnp.einsum('bhwc,cd->bhwd', out.astype(bf), p['w3'].astype(bf),
                     preferred_element_type=f32)
    out = bn(out, p['bn3_scale'], p['bn3_bias'])
    out = jnp.maximum(out + x, 0.0)

    y = jnp.mean(out, axis=(1, 2))
    k = p['wq'].shape[0]
    pad = (k - 1) // 2

    def conv1d(yv, wk):
        yp = jnp.pad(yv, ((0, 0), (pad, pad)))
        return sum(wk[i] * yp[:, i:i + C4] for i in range(k))

    q = conv1d(y, p['wq'])
    kk = conv1d(y, p['wk'])
    heads = C4 // DIM_PERHEAD
    attn = jax.nn.sigmoid(
        jnp.sum(q.reshape(B, heads, DIM_PERHEAD) *
                kk.reshape(B, heads, DIM_PERHEAD), -1) / np.sqrt(DIM_PERHEAD))
    attn_pc = jnp.repeat(attn, DIM_PERHEAD, axis=1)[:, None, None, :]

    wv = p['wv'].reshape(3, 3, 1, C4)
    v = lax.conv_general_dilated(out, wv, (1, 1), 'SAME',
                                 dimension_numbers=('NHWC', 'HWIO', 'NHWC'),
                                 feature_group_count=C4, precision=hp)
    mrla = v * attn_pc + p['lam'][None, None, None, :] * x
    out = out + bn(mrla, p['bn_mrla_scale'], p['bn_mrla_bias'])
    return jnp.transpose(out, (0, 3, 1, 2))


if __name__ == "__main__":
    key = jax.random.PRNGKey(0)
    kx, kp = jax.random.split(key)
    # inplanes = planes*4 (downsample=None), heads = C4/32 = 2
    B, inplanes, planes, H, W = 2, 64, 16, 8, 8
    x = jax.random.normal(kx, (B, inplanes, H, W), dtype=jnp.float32)
    params = make_params(kp, inplanes, planes)

    out = jax.block_until_ready(jax.jit(bottleneck_forward)(x, params))
    ref = jax.block_until_ready(reference_forward(x, params))
    np.testing.assert_allclose(np.asarray(out), np.asarray(ref),
                               rtol=2e-2, atol=2e-2)
    print("KERNEL_OK")
</pallas_src>

<mosaic_0001>
module attributes {stable_mosaic.version = 11 : i64} {
  func.func @_bottleneck_fused_kernel(%arg0: i32, %arg1: memref<1x64x64xf32, #tpu.memory_space<vmem>>, %arg2: memref<64x16xbf16, #tpu.memory_space<vmem>>, %arg3: memref<1x16xf32, #tpu.memory_space<vmem>>, %arg4: memref<1x16xf32, #tpu.memory_space<vmem>>, %arg5: memref<144x16xbf16, #tpu.memory_space<vmem>>, %arg6: memref<1x16xf32, #tpu.memory_space<vmem>>, %arg7: memref<1x16xf32, #tpu.memory_space<vmem>>, %arg8: memref<16x64xbf16, #tpu.memory_space<vmem>>, %arg9: memref<1x64xf32, #tpu.memory_space<vmem>>, %arg10: memref<1x64xf32, #tpu.memory_space<vmem>>, %arg11: memref<64x64xf32, #tpu.memory_space<vmem>>, %arg12: memref<64x64xf32, #tpu.memory_space<vmem>>, %arg13: memref<64x64xf32, #tpu.memory_space<vmem>>, %arg14: memref<9x64xf32, #tpu.memory_space<vmem>>, %arg15: memref<1x64xf32, #tpu.memory_space<vmem>>, %arg16: memref<1x64xf32, #tpu.memory_space<vmem>>, %arg17: memref<1x64xf32, #tpu.memory_space<vmem>>, %arg18: memref<1x64x64xf32, #tpu.memory_space<vmem>>, %arg19: memref<10x10x16xf32, #tpu.memory_space<vmem>>, %arg20: memref<64x144xbf16, #tpu.memory_space<vmem>>, %arg21: memref<10x10x64xf32, #tpu.memory_space<vmem>>) attributes {dimension_semantics = [#tpu.dimension_semantics<parallel>], iteration_bounds = array<i64: 2>, scalar_prefetch = 0 : i64, scratch_operands = 3 : i64, tpu.core_type = #tpu.core_type<tc>, window_params = [{transform_indices = @transform_0, window_bounds = array<i64: 1, 64, 64>}, {pipeline_mode = #tpu.pipeline_mode<synchronous>, transform_indices = @transform_1, window_bounds = array<i64: 64, 16>}, {pipeline_mode = #tpu.pipeline_mode<synchronous>, transform_indices = @transform_2, window_bounds = array<i64: 1, 16>}, {pipeline_mode = #tpu.pipeline_mode<synchronous>, transform_indices = @transform_3, window_bounds = array<i64: 1, 16>}, {pipeline_mode = #tpu.pipeline_mode<synchronous>, transform_indices = @transform_4, window_bounds = array<i64: 144, 16>}, {pipeline_mode = #tpu.pipeline_mode<synchronous>, transform_indices = @transform_5, window_bounds = array<i64: 1, 16>}, {pipeline_mode = #tpu.pipeline_mode<synchronous>, transform_indices = @transform_6, window_bounds = array<i64: 1, 16>}, {pipeline_mode = #tpu.pipeline_mode<synchronous>, transform_indices = @transform_7, window_bounds = array<i64: 16, 64>}, {pipeline_mode = #tpu.pipeline_mode<synchronous>, transform_indices = @transform_8, window_bounds = array<i64: 1, 64>}, {pipeline_mode = #tpu.pipeline_mode<synchronous>, transform_indices = @transform_9, window_bounds = array<i64: 1, 64>}, {pipeline_mode = #tpu.pipeline_mode<synchronous>, transform_indices = @transform_10, window_bounds = array<i64: 64, 64>}, {pipeline_mode = #tpu.pipeline_mode<synchronous>, transform_indices = @transform_11, window_bounds = array<i64: 64, 64>}, {pipeline_mode = #tpu.pipeline_mode<synchronous>, transform_indices = @transform_12, window_bounds = array<i64: 64, 64>}, {pipeline_mode = #tpu.pipeline_mode<synchronous>, transform_indices = @transform_13, window_bounds = array<i64: 9, 64>}, {pipeline_mode = #tpu.pipeline_mode<synchronous>, transform_indices = @transform_14, window_bounds = array<i64: 1, 64>}, {pipeline_mode = #tpu.pipeline_mode<synchronous>, transform_indices = @transform_15, window_bounds = array<i64: 1, 64>}, {pipeline_mode = #tpu.pipeline_mode<synchronous>, transform_indices = @transform_16, window_bounds = array<i64: 1, 64>}, {transform_indices = @transform_17, window_bounds = array<i64: 1, 64, 64>}]} {
    %cst = arith.constant 0.000000e+00 : f32
    %0 = vector.broadcast %cst : f32 to vector<1x10x16xf32>
    %cst_0 = arith.constant 0.000000e+00 : f32
    %1 = vector.broadcast %cst_0 : f32 to vector<10x1x16xf32>
    %c0 = arith.constant 0 : index
    %c0_1 = arith.constant 0 : index
    %c0_2 = arith.constant 0 : index
    %2 = vector.load %arg19[%c0, %c0_1, %c0_2] : memref<10x10x16xf32, #tpu.memory_space<vmem>>, vector<1x10x16xf32>
    tpu.vector_store %arg19[%c0, %c0_1, %c0_2], %0 {strides = array<i32>} : memref<10x10x16xf32, #tpu.memory_space<vmem>>, vector<1x10x16xf32>,
    %c9 = arith.constant 9 : index
    %c0_3 = arith.constant 0 : index
    %c0_4 = arith.constant 0 : index
    %3 = vector.load %arg19[%c9, %c0_3, %c0_4] : memref<10x10x16xf32, #tpu.memory_space<vmem>>, vector<1x10x16xf32>
    tpu.vector_store %arg19[%c9, %c0_3, %c0_4], %0 {strides = array<i32>} : memref<10x10x16xf32, #tpu.memory_space<vmem>>, vector<1x10x16xf32>,
    %c0_5 = arith.constant 0 : index
    %c0_6 = arith.constant 0 : index
    %c0_7 = arith.constant 0 : index
    %4 = vector.load %arg19[%c0_5, %c0_6, %c0_7] : memref<10x10x16xf32, #tpu.memory_space<vmem>>, vector<10x1x16xf32>
    tpu.vector_store %arg19[%c0_5, %c0_6, %c0_7], %1 {strides = array<i32>} : memref<10x10x16xf32, #tpu.memory_space<vmem>>, vector<10x1x16xf32>,
    %c0_8 = arith.constant 0 : index
    %c9_9 = arith.constant 9 : index
    %c0_10 = arith.constant 0 : index
    %5 = vector.load %arg19[%c0_8, %c9_9, %c0_10] : memref<10x10x16xf32, #tpu.memory_space<vmem>>, vector<10x1x16xf32>
    tpu.vector_store %arg19[%c0_8, %c9_9, %c0_10], %1 {strides = array<i32>} : memref<10x10x16xf32, #tpu.memory_space<vmem>>, vector<10x1x16xf32>,
    %cst_11 = arith.constant 0.000000e+00 : f32
    %6 = vector.broadcast %cst_11 : f32 to vector<1x10x64xf32>
    %cst_12 = arith.constant 0.000000e+00 : f32
    %7 = vector.broadcast %cst_12 : f32 to vector<10x1x64xf32>
    %c0_13 = arith.constant 0 : index
    %c0_14 = arith.constant 0 : index
    %c0_15 = arith.constant 0 : index
    %8 = vector.load %arg21[%c0_13, %c0_14, %c0_15] : memref<10x10x64xf32, #tpu.memory_space<vmem>>, vector<1x10x64xf32>
    tpu.vector_store %arg21[%c0_13, %c0_14, %c0_15], %6 {strides = array<i32>} : memref<10x10x64xf32, #tpu.memory_space<vmem>>, vector<1x10x64xf32>,
    %c9_16 = arith.constant 9 : index
    %c0_17 = arith.constant 0 : index
    %c0_18 = arith.constant 0 : index
    %9 = vector.load %arg21[%c9_16, %c0_17, %c0_18] : memref<10x10x64xf32, #tpu.memory_space<vmem>>, vector<1x10x64xf32>
    tpu.vector_store %arg21[%c9_16, %c0_17, %c0_18], %6 {strides = array<i32>} : memref<10x10x64xf32, #tpu.memory_space<vmem>>, vector<1x10x64xf32>,
    %c0_19 = arith.constant 0 : index
    %c0_20 = arith.constant 0 : index
    %c0_21 = arith.constant 0 : index
    %10 = vector.load %arg21[%c0_19, %c0_20, %c0_21] : memref<10x10x64xf32, #tpu.memory_space<vmem>>, vector<10x1x64xf32>
    tpu.vector_store %arg21[%c0_19, %c0_20, %c0_21], %7 {strides = array<i32>} : memref<10x10x64xf32, #tpu.memory_space<vmem>>, vector<10x1x64xf32>,
    %c0_22 = arith.constant 0 : index
    %c9_23 = arith.constant 9 : index
    %c0_24 = arith.constant 0 : index
    %11 = vector.load %arg21[%c0_22, %c9_23, %c0_24] : memref<10x10x64xf32, #tpu.memory_space<vmem>>, vector<10x1x64xf32>
    tpu.vector_store %arg21[%c0_22, %c9_23, %c0_24], %7 {strides = array<i32>} : memref<10x10x64xf32, #tpu.memory_space<vmem>>, vector<10x1x64xf32>,
    %c0_25 = arith.constant 0 : index
    %c0_26 = arith.constant 0 : index
    %c0_27 = arith.constant 0 : index
    %12 = vector.load %arg1[%c0_25, %c0_26, %c0_27] : memref<1x64x64xf32, #tpu.memory_space<vmem>>, vector<1x64x64xf32>
    %13 = vector.shape_cast %12 : vector<1x64x64xf32> to vector<64x64xf32>
    %14 = arith.truncf %13 : vector<64x64xf32> to vector<64x64xbf16>
    %c0_28 = arith.constant 0 : index
    %c0_29 = arith.constant 0 : index
    %15 = vector.load %arg2[%c0_28, %c0_29] : memref<64x16xbf16, #tpu.memory_space<vmem>>, vector<64x16xbf16>
    %cst_30 = arith.constant dense<0.000000e+00> : vector<64x16xf32>
    %16 = tpu.matmul %14, %15, %cst_30 {dimension_numbers = #tpu.dot_dimension_numbers<[1], [0], [0], [1], [0, 0, 1, 1], [], []>} : vector<64x64xbf16>, vector<64x16xbf16>, vector<64x16xf32> -> vector<64x16xf32>
    %c0_31 = arith.constant 0 : index
    %c0_32 = arith.constant 0 : index
    %17 = vector.load %arg3[%c0_31, %c0_32] : memref<1x16xf32, #tpu.memory_space<vmem>>, vector<1x16xf32>
    %18 = vector.broadcast %17 : vector<1x16xf32> to vector<64x16xf32>
    %19 = arith.mulf %16, %18 : vector<64x16xf32>
    %c0_33 = arith.constant 0 : index
    %c0_34 = arith.constant 0 : index
    %20 = vector.load %arg4[%c0_33, %c0_34] : memref<1x16xf32, #tpu.memory_space<vmem>>, vector<1x16xf32>
    %21 = vector.broadcast %20 : vector<1x16xf32> to vector<64x16xf32>
    %22 = arith.addf %19, %21 : vector<64x16xf32>
    %cst_35 = arith.constant 0.000000e+00 : f32
    %23 = vector.broadcast %cst_35 : f32 to vector<64x16xf32>
    %24 = arith.maximumf %22, %23 : vector<64x16xf32>
    %25 = vector.shape_cast %24 : vector<64x16xf32> to vector<8x8x16xf32>
    %c1 = arith.constant 1 : index
    %c1_36 = arith.constant 1 : index
    %c0_37 = arith.constant 0 : index
    %26 = vector.load %arg19[%c1, %c1_36, %c0_37] : memref<10x10x16xf32, #tpu.memory_space<vmem>>, vector<8x8x16xf32>
    tpu.vector_store %arg19[%c1, %c1_36, %c0_37], %25 {strides = array<i32>} : memref<10x10x16xf32, #tpu.memory_space<vmem>>, vector<8x8x16xf32>,
    %c0_38 = arith.constant 0 : index
    %c0_39 = arith.constant 0 : index
    %c0_40 = arith.constant 0 : index
    %27 = vector.load %arg19[%c0_38, %c0_39, %c0_40] : memref<10x10x16xf32, #tpu.memory_space<vmem>>, vector<8x8x16xf32>
    %28 = vector.shape_cast %27 : vector<8x8x16xf32> to vector<64x16xf32>
    %29 = arith.truncf %28 : vector<64x16xf32> to vector<64x16xbf16>
    %c0_41 = arith.constant 0 : index
    %c0_42 = arith.constant 0 : index
    %30 = vector.load %arg20[%c0_41, %c0_42] : memref<64x144xbf16, #tpu.memory_space<vmem>>, vector<64x16xbf16>
    tpu.vector_store %arg20[%c0_41, %c0_42], %29 {strides = array<i32>} : memref<64x144xbf16, #tpu.memory_space<vmem>>, vector<64x16xbf16>,
    %c0_43 = arith.constant 0 : index
    %c1_44 = arith.constant 1 : index
    %c0_45 = arith.constant 0 : index
    %31 = vector.load %arg19[%c0_43, %c1_44, %c0_45] : memref<10x10x16xf32, #tpu.memory_space<vmem>>, vector<8x8x16xf32>
    %32 = vector.shape_cast %31 : vector<8x8x16xf32> to vector<64x16xf32>
    %33 = arith.truncf %32 : vector<64x16xf32> to vector<64x16xbf16>
    %c0_46 = arith.constant 0 : index
    %c16 = arith.constant 16 : index
    %34 = vector.load %arg20[%c0_46, %c16] : memref<64x144xbf16, #tpu.memory_space<vmem>>, vector<64x16xbf16>
    tpu.vector_store %arg20[%c0_46, %c16], %33 {strides = array<i32>} : memref<64x144xbf16, #tpu.memory_space<vmem>>, vector<64x16xbf16>,
    %c0_47 = arith.constant 0 : index
    %c2 = arith.constant 2 : index
    %c0_48 = arith.constant 0 : index
    %35 = vector.load %arg19[%c0_47, %c2, %c0_48] : memref<10x10x16xf32, #tpu.memory_space<vmem>>, vector<8x8x16xf32>
    %36 = vector.shape_cast %35 : vector<8x8x16xf32> to vector<64x16xf32>
    %37 = arith.truncf %36 : vector<64x16xf32> to vector<64x16xbf16>
    %c0_49 = arith.constant 0 : index
    %c32 = arith.constant 32 : index
    %38 = vector.load %arg20[%c0_49, %c32] : memref<64x144xbf16, #tpu.memory_space<vmem>>, vector<64x16xbf16>
    tpu.vector_store %arg20[%c0_49, %c32], %37 {strides = array<i32>} : memref<64x144xbf16, #tpu.memory_space<vmem>>, vector<64x16xbf16>,
    %c1_50 = arith.constant 1 : index
    %c0_51 = arith.constant 0 : index
    %c0_52 = arith.constant 0 : index
    %39 = vector.load %arg19[%c1_50, %c0_51, %c0_52] : memref<10x10x16xf32, #tpu.memory_space<vmem>>, vector<8x8x16xf32>
    %40 = vector.shape_cast %39 : vector<8x8x16xf32> to vector<64x16xf32>
    %41 = arith.truncf %40 : vector<64x16xf32> to vector<64x16xbf16>
    %c0_53 = arith.constant 0 : index
    %c48 = arith.constant 48 : index
    %42 = vector.load %arg20[%c0_53, %c48] : memref<64x144xbf16, #tpu.memory_space<vmem>>, vector<64x16xbf16>
    tpu.vector_store %arg20[%c0_53, %c48], %41 {strides = array<i32>} : memref<64x144xbf16, #tpu.memory_space<vmem>>, vector<64x16xbf16>,
    %c1_54 = arith.constant 1 : index
    %c1_55 = arith.constant 1 : index
    %c0_56 = arith.constant 0 : index
    %43 = vector.load %arg19[%c1_54, %c1_55, %c0_56] : memref<10x10x16xf32, #tpu.memory_space<vmem>>, vector<8x8x16xf32>
    %44 = vector.shape_cast %43 : vector<8x8x16xf32> to vector<64x16xf32>
    %45 = arith.truncf %44 : vector<64x16xf32> to vector<64x16xbf16>
    %c0_57 = arith.constant 0 : index
    %c64 = arith.constant 64 : index
    %46 = vector.load %arg20[%c0_57, %c64] : memref<64x144xbf16, #tpu.memory_space<vmem>>, vector<64x16xbf16>
    tpu.vector_store %arg20[%c0_57, %c64], %45 {strides = array<i32>} : memref<64x144xbf16, #tpu.memory_space<vmem>>, vector<64x16xbf16>,
    %c1_58 = arith.constant 1 : index
    %c2_59 = arith.constant 2 : index
    %c0_60 = arith.constant 0 : index
    %47 = vector.load %arg19[%c1_58, %c2_59, %c0_60] : memref<10x10x16xf32, #tpu.memory_space<vmem>>, vector<8x8x16xf32>
    %48 = vector.shape_cast %47 : vector<8x8x16xf32> to vector<64x16xf32>
    %49 = arith.truncf %48 : vector<64x16xf32> to vector<64x16xbf16>
    %c0_61 = arith.constant 0 : index
    %c80 = arith.constant 80 : index
    %50 = vector.load %arg20[%c0_61, %c80] : memref<64x144xbf16, #tpu.memory_space<vmem>>, vector<64x16xbf16>
    tpu.vector_store %arg20[%c0_61, %c80], %49 {strides = array<i32>} : memref<64x144xbf16, #tpu.memory_space<vmem>>, vector<64x16xbf16>,
    %c2_62 = arith.constant 2 : index
    %c0_63 = arith.constant 0 : index
    %c0_64 = arith.constant 0 : index
    %51 = vector.load %arg19[%c2_62, %c0_63, %c0_64] : memref<10x10x16xf32, #tpu.memory_space<vmem>>, vector<8x8x16xf32>
    %52 = vector.shape_cast %51 : vector<8x8x16xf32> to vector<64x16xf32>
    %53 = arith.truncf %52 : vector<64x16xf32> to vector<64x16xbf16>
    %c0_65 = arith.constant 0 : index
    %c96 = arith.constant 96 : index
    %54 = vector.load %arg20[%c0_65, %c96] : memref<64x144xbf16, #tpu.memory_space<vmem>>, vector<64x16xbf16>
    tpu.vector_store %arg20[%c0_65, %c96], %53 {strides = array<i32>} : memref<64x144xbf16, #tpu.memory_space<vmem>>, vector<64x16xbf16>,
    %c2_66 = arith.constant 2 : index
    %c1_67 = arith.constant 1 : index
    %c0_68 = arith.constant 0 : index
    %55 = vector.load %arg19[%c2_66, %c1_67, %c0_68] : memref<10x10x16xf32, #tpu.memory_space<vmem>>, vector<8x8x16xf32>
    %56 = vector.shape_cast %55 : vector<8x8x16xf32> to vector<64x16xf32>
    %57 = arith.truncf %56 : vector<64x16xf32> to vector<64x16xbf16>
    %c0_69 = arith.constant 0 : index
    %c112 = arith.constant 112 : index
    %58 = vector.load %arg20[%c0_69, %c112] : memref<64x144xbf16, #tpu.memory_space<vmem>>, vector<64x16xbf16>
    tpu.vector_store %arg20[%c0_69, %c112], %57 {strides = array<i32>} : memref<64x144xbf16, #tpu.memory_space<vmem>>, vector<64x16xbf16>,
    %c2_70 = arith.constant 2 : index
    %c2_71 = arith.constant 2 : index
    %c0_72 = arith.constant 0 : index
    %59 = vector.load %arg19[%c2_70, %c2_71, %c0_72] : memref<10x10x16xf32, #tpu.memory_space<vmem>>, vector<8x8x16xf32>
    %60 = vector.shape_cast %59 : vector<8x8x16xf32> to vector<64x16xf32>
    %61 = arith.truncf %60 : vector<64x16xf32> to vector<64x16xbf16>
    %c0_73 = arith.constant 0 : index
    %c128 = arith.constant 128 : index
    %62 = vector.load %arg20[%c0_73, %c128] : memref<64x144xbf16, #tpu.memory_space<vmem>>, vector<64x16xbf16>
    tpu.vector_store %arg20[%c0_73, %c128], %61 {strides = array<i32>} : memref<64x144xbf16, #tpu.memory_space<vmem>>, vector<64x16xbf16>,
    %c0_74 = arith.constant 0 : index
    %c0_75 = arith.constant 0 : index
    %63 = vector.load %arg20[%c0_74, %c0_75] : memref<64x144xbf16, #tpu.memory_space<vmem>>, vector<64x144xbf16>
    %c0_76 = arith.constant 0 : index
    %c0_77 = arith.constant 0 : index
    %64 = vector.load %arg5[%c0_76, %c0_77] : memref<144x16xbf16, #tpu.memory_space<vmem>>, vector<144x16xbf16>
    %cst_78 = arith.constant dense<0.000000e+00> : vector<64x16xf32>
    %65 = tpu.matmul %63, %64, %cst_78 {dimension_numbers = #tpu.dot_dimension_numbers<[1], [0], [0], [1], [0, 0, 1, 1], [], []>} : vector<64x144xbf16>, vector<144x16xbf16>, vector<64x16xf32> -> vector<64x16xf32>
    %c0_79 = arith.constant 0 : index
    %c0_80 = arith.constant 0 : index
    %66 = vector.load %arg6[%c0_79, %c0_80] : memref<1x16xf32, #tpu.memory_space<vmem>>, vector<1x16xf32>
    %67 = vector.broadcast %66 : vector<1x16xf32> to vector<64x16xf32>
    %68 = arith.mulf %65, %67 : vector<64x16xf32>
    %c0_81 = arith.constant 0 : index
    %c0_82 = arith.constant 0 : index
    %69 = vector.load %arg7[%c0_81, %c0_82] : memref<1x16xf32, #tpu.memory_space<vmem>>, vector<1x16xf32>
    %70 = vector.broadcast %69 : vector<1x16xf32> to vector<64x16xf32>
    %71 = arith.addf %68, %70 : vector<64x16xf32>
    %cst_83 = arith.constant 0.000000e+00 : f32
    %72 = vector.broadcast %cst_83 : f32 to vector<64x16xf32>
    %73 = arith.maximumf %71, %72 : vector<64x16xf32>
    %74 = arith.truncf %73 : vector<64x16xf32> to vector<64x16xbf16>
    %c0_84 = arith.constant 0 : index
    %c0_85 = arith.constant 0 : index
    %75 = vector.load %arg8[%c0_84, %c0_85] : memref<16x64xbf16, #tpu.memory_space<vmem>>, vector<16x64xbf16>
    %cst_86 = arith.constant dense<0.000000e+00> : vector<64x64xf32>
    %76 = tpu.matmul %74, %75, %cst_86 {dimension_numbers = #tpu.dot_dimension_numbers<[1], [0], [0], [1], [0, 0, 1, 1], [], []>} : vector<64x16xbf16>, vector<16x64xbf16>, vector<64x64xf32> -> vector<64x64xf32>
    %c0_87 = arith.constant 0 : index
    %c0_88 = arith.constant 0 : index
    %77 = vector.load %arg9[%c0_87, %c0_88] : memref<1x64xf32, #tpu.memory_space<vmem>>, vector<1x64xf32>
    %78 = vector.broadcast %77 : vector<1x64xf32> to vector<64x64xf32>
    %79 = arith.mulf %76, %78 : vector<64x64xf32>
    %c0_89 = arith.constant 0 : index
    %c0_90 = arith.constant 0 : index
    %80 = vector.load %arg10[%c0_89, %c0_90] : memref<1x64xf32, #tpu.memory_space<vmem>>, vector<1x64xf32>
    %81 = vector.broadcast %80 : vector<1x64xf32> to vector<64x64xf32>
    %82 = arith.addf %79, %81 : vector<64x64xf32>
    %83 = arith.addf %82, %13 : vector<64x64xf32>
    %cst_91 = arith.constant 0.000000e+00 : f32
    %84 = vector.broadcast %cst_91 : f32 to vector<64x64xf32>
    %85 = arith.maximumf %83, %84 : vector<64x64xf32>
    %cst_92 = arith.constant dense<0.000000e+00> : vector<64xf32>
    %86 = vector.multi_reduction <add>, %85, %cst_92 [0] : vector<64x64xf32> to vector<64xf32>
    %87 = vector.shape_cast %86 : vector<64xf32> to vector<1x64xf32>
    %c0_93 = arith.constant 0 : index
    %c0_94 = arith.constant 0 : index
    %88 = vector.load %arg11[%c0_93, %c0_94] : memref<64x64xf32, #tpu.memory_space<vmem>>, vector<64x64xf32>
    %cst_95 = arith.constant dense<0.000000e+00> : vector<1x64xf32>
    %89 = tpu.matmul %87, %88, %cst_95 {dimension_numbers = #tpu.dot_dimension_numbers<[1], [0], [0], [1], [0, 0, 1, 1], [], []>} : vector<1x64xf32>, vector<64x64xf32>, vector<1x64xf32> -> vector<1x64xf32>
    %c0_96 = arith.constant 0 : index
    %c0_97 = arith.constant 0 : index
    %90 = vector.load %arg12[%c0_96, %c0_97] : memref<64x64xf32, #tpu.memory_space<vmem>>, vector<64x64xf32>
    %cst_98 = arith.constant dense<0.000000e+00> : vector<1x64xf32>
    %91 = tpu.matmul %87, %90, %cst_98 {dimension_numbers = #tpu.dot_dimension_numbers<[1], [0], [0], [1], [0, 0, 1, 1], [], []>} : vector<1x64xf32>, vector<64x64xf32>, vector<1x64xf32> -> vector<1x64xf32>
    %92 = arith.mulf %89, %91 : vector<1x64xf32>
    %c0_99 = arith.constant 0 : index
    %c0_100 = arith.constant 0 : index
    %93 = vector.load %arg13[%c0_99, %c0_100] : memref<64x64xf32, #tpu.memory_space<vmem>>, vector<64x64xf32>
    %cst_101 = arith.constant dense<0.000000e+00> : vector<1x64xf32>
    %94 = tpu.matmul %92, %93, %cst_101 {dimension_numbers = #tpu.dot_dimension_numbers<[1], [0], [0], [1], [0, 0, 1, 1], [], []>} : vector<1x64xf32>, vector<64x64xf32>, vector<1x64xf32> -> vector<1x64xf32>
    %95 = arith.negf %94 : vector<1x64xf32>
    %96 = math.exp %95 : vector<1x64xf32>
    %cst_102 = arith.constant 1.000000e+00 : f32
    %97 = vector.broadcast %cst_102 : f32 to vector<1x64xf32>
    %98 = arith.addf %97, %96 : vector<1x64xf32>
    %99 = arith.divf %97, %98 : vector<1x64xf32>
    %100 = vector.shape_cast %85 : vector<64x64xf32> to vector<8x8x64xf32>
    %c1_103 = arith.constant 1 : index
    %c1_104 = arith.constant 1 : index
    %c0_105 = arith.constant 0 : index
    %101 = vector.load %arg21[%c1_103, %c1_104, %c0_105] : memref<10x10x64xf32, #tpu.memory_space<vmem>>, vector<8x8x64xf32>
    tpu.vector_store %arg21[%c1_103, %c1_104, %c0_105], %100 {strides = array<i32>} : memref<10x10x64xf32, #tpu.memory_space<vmem>>, vector<8x8x64xf32>,
    %cst_106 = arith.constant 0.000000e+00 : f32
    %102 = vector.broadcast %cst_106 : f32 to vector<64x64xf32>
    %c0_107 = arith.constant 0 : index
    %c0_108 = arith.constant 0 : index
    %c0_109 = arith.constant 0 : index
    %103 = vector.load %arg21[%c0_107, %c0_108, %c0_109] : memref<10x10x64xf32, #tpu.memory_space<vmem>>, vector<8x8x64xf32>
    %104 = vector.shape_cast %103 : vector<8x8x64xf32> to vector<64x64xf32>
    %c0_110 = arith.constant 0 : index
    %c0_111 = arith.constant 0 : index
    %105 = vector.load %arg14[%c0_110, %c0_111] : memref<9x64xf32, #tpu.memory_space<vmem>>, vector<1x64xf32>
    %106 = vector.broadcast %105 : vector<1x64xf32> to vector<64x64xf32>
    %107 = arith.mulf %104, %106 : vector<64x64xf32>
    %108 = arith.addf %102, %107 : vector<64x64xf32>
    %c0_112 = arith.constant 0 : index
    %c1_113 = arith.constant 1 : index
    %c0_114 = arith.constant 0 : index
    %109 = vector.load %arg21[%c0_112, %c1_113, %c0_114] : memref<10x10x64xf32, #tpu.memory_space<vmem>>, vector<8x8x64xf32>
    %110 = vector.shape_cast %109 : vector<8x8x64xf32> to vector<64x64xf32>
    %c1_115 = arith.constant 1 : index
    %c0_116 = arith.constant 0 : index
    %111 = vector.load %arg14[%c1_115, %c0_116] : memref<9x64xf32, #tpu.memory_space<vmem>>, vector<1x64xf32>
    %112 = vector.broadcast %111 : vector<1x64xf32> to vector<64x64xf32>
    %113 = arith.mulf %110, %112 : vector<64x64xf32>
    %114 = arith.addf %108, %113 : vector<64x64xf32>
    %c0_117 = arith.constant 0 : index
    %c2_118 = arith.constant 2 : index
    %c0_119 = arith.constant 0 : index
    %115 = vector.load %arg21[%c0_117, %c2_118, %c0_119] : memref<10x10x64xf32, #tpu.memory_space<vmem>>, vector<8x8x64xf32>
    %116 = vector.shape_cast %115 : vector<8x8x64xf32> to vector<64x64xf32>
    %c2_120 = arith.constant 2 : index
    %c0_121 = arith.constant 0 : index
    %117 = vector.load %arg14[%c2_120, %c0_121] : memref<9x64xf32, #tpu.memory_space<vmem>>, vector<1x64xf32>
    %118 = vector.broadcast %117 : vector<1x64xf32> to vector<64x64xf32>
    %119 = arith.mulf %116, %118 : vector<64x64xf32>
    %120 = arith.addf %114, %119 : vector<64x64xf32>
    %c1_122 = arith.constant 1 : index
    %c0_123 = arith.constant 0 : index
    %c0_124 = arith.constant 0 : index
    %121 = vector.load %arg21[%c1_122, %c0_123, %c0_124] : memref<10x10x64xf32, #tpu.memory_space<vmem>>, vector<8x8x64xf32>
    %122 = vector.shape_cast %121 : vector<8x8x64xf32> to vector<64x64xf32>
    %c3 = arith.constant 3 : index
    %c0_125 = arith.constant 0 : index
    %123 = vector.load %arg14[%c3, %c0_125] : memref<9x64xf32, #tpu.memory_space<vmem>>, vector<1x64xf32>
    %124 = vector.broadcast %123 : vector<1x64xf32> to vector<64x64xf32>
    %125 = arith.mulf %122, %124 : vector<64x64xf32>
    %126 = arith.addf %120, %125 : vector<64x64xf32>
    %c1_126 = arith.constant 1 : index
    %c1_127 = arith.constant 1 : index
    %c0_128 = arith.constant 0 : index
    %127 = vector.load %arg21[%c1_126, %c1_127, %c0_128] : memref<10x10x64xf32, #tpu.memory_space<vmem>>, vector<8x8x64xf32>
    %128 = vector.shape_cast %127 : vector<8x8x64xf32> to vector<64x64xf32>
    %c4 = arith.constant 4 : index
    %c0_129 = arith.constant 0 : index
    %129 = vector.load %arg14[%c4, %c0_129] : memref<9x64xf32, #tpu.memory_space<vmem>>, vector<1x64xf32>
    %130 = vector.broadcast %129 : vector<1x64xf32> to vector<64x64xf32>
    %131 = arith.mulf %128, %130 : vector<64x64xf32>
    %132 = arith.addf %126, %131 : vector<64x64xf32>
    %c1_130 = arith.constant 1 : index
    %c2_131 = arith.constant 2 : index
    %c0_132 = arith.constant 0 : index
    %133 = vector.load %arg21[%c1_130, %c2_131, %c0_132] : memref<10x10x64xf32, #tpu.memory_space<vmem>>, vector<8x8x64xf32>
    %134 = vector.shape_cast %133 : vector<8x8x64xf32> to vector<64x64xf32>
    %c5 = arith.constant 5 : index
    %c0_133 = arith.constant 0 : index
    %135 = vector.load %arg14[%c5, %c0_133] : memref<9x64xf32, #tpu.memory_space<vmem>>, vector<1x64xf32>
    %136 = vector.broadcast %135 : vector<1x64xf32> to vector<64x64xf32>
    %137 = arith.mulf %134, %136 : vector<64x64xf32>
    %138 = arith.addf %132, %137 : vector<64x64xf32>
    %c2_134 = arith.constant 2 : index
    %c0_135 = arith.constant 0 : index
    %c0_136 = arith.constant 0 : index
    %139 = vector.load %arg21[%c2_134, %c0_135, %c0_136] : memref<10x10x64xf32, #tpu.memory_space<vmem>>, vector<8x8x64xf32>
    %140 = vector.shape_cast %139 : vector<8x8x64xf32> to vector<64x64xf32>
    %c6 = arith.constant 6 : index
    %c0_137 = arith.constant 0 : index
    %141 = vector.load %arg14[%c6, %c0_137] : memref<9x64xf32, #tpu.memory_space<vmem>>, vector<1x64xf32>
    %142 = vector.broadcast %141 : vector<1x64xf32> to vector<64x64xf32>
    %143 = arith.mulf %140, %142 : vector<64x64xf32>
    %144 = arith.addf %138, %143 : vector<64x64xf32>
    %c2_138 = arith.constant 2 : index
    %c1_139 = arith.constant 1 : index
    %c0_140 = arith.constant 0 : index
    %145 = vector.load %arg21[%c2_138, %c1_139, %c0_140] : memref<10x10x64xf32, #tpu.memory_space<vmem>>, vector<8x8x64xf32>
    %146 = vector.shape_cast %145 : vector<8x8x64xf32> to vector<64x64xf32>
    %c7 = arith.constant 7 : index
    %c0_141 = arith.constant 0 : index
    %147 = vector.load %arg14[%c7, %c0_141] : memref<9x64xf32, #tpu.memory_space<vmem>>, vector<1x64xf32>
    %148 = vector.broadcast %147 : vector<1x64xf32> to vector<64x64xf32>
    %149 = arith.mulf %146, %148 : vector<64x64xf32>
    %150 = arith.addf %144, %149 : vector<64x64xf32>
    %c2_142 = arith.constant 2 : index
    %c2_143 = arith.constant 2 : index
    %c0_144 = arith.constant 0 : index
    %151 = vector.load %arg21[%c2_142, %c2_143, %c0_144] : memref<10x10x64xf32, #tpu.memory_space<vmem>>, vector<8x8x64xf32>
    %152 = vector.shape_cast %151 : vector<8x8x64xf32> to vector<64x64xf32>
    %c8 = arith.constant 8 : index
    %c0_145 = arith.constant 0 : index
    %153 = vector.load %arg14[%c8, %c0_145] : memref<9x64xf32, #tpu.memory_space<vmem>>, vector<1x64xf32>
    %154 = vector.broadcast %153 : vector<1x64xf32> to vector<64x64xf32>
    %155 = arith.mulf %152, %154 : vector<64x64xf32>
    %156 = arith.addf %150, %155 : vector<64x64xf32>
    %157 = vector.broadcast %99 : vector<1x64xf32> to vector<64x64xf32>
    %158 = arith.mulf %156, %157 : vector<64x64xf32>
    %c0_146 = arith.constant 0 : index
    %c0_147 = arith.constant 0 : index
    %159 = vector.load %arg15[%c0_146, %c0_147] : memref<1x64xf32, #tpu.memory_space<vmem>>, vector<1x64xf32>
    %160 = vector.broadcast %159 : vector<1x64xf32> to vector<64x64xf32>
    %161 = arith.mulf %160, %13 : vector<64x64xf32>
    %162 = arith.addf %158, %161 : vector<64x64xf32>
    %c0_148 = arith.constant 0 : index
    %c0_149 = arith.constant 0 : index
    %163 = vector.load %arg16[%c0_148, %c0_149] : memref<1x64xf32, #tpu.memory_space<vmem>>, vector<1x64xf32>
    %164 = vector.broadcast %163 : vector<1x64xf32> to vector<64x64xf32>
    %165 = arith.mulf %162, %164 : vector<64x64xf32>
    %166 = arith.addf %85, %165 : vector<64x64xf32>
    %c0_150 = arith.constant 0 : index
    %c0_151 = arith.constant 0 : index
    %167 = vector.load %arg17[%c0_150, %c0_151] : memref<1x64xf32, #tpu.memory_space<vmem>>, vector<1x64xf32>
    %168 = vector.broadcast %167 : vector<1x64xf32> to vector<64x64xf32>
    %169 = arith.addf %166, %168 : vector<64x64xf32>
    %c0_152 = arith.constant 0 : index
    %c0_153 = arith.constant 0 : index
    %c0_154 = arith.constant 0 : index
    %170 = vector.load %arg18[%c0_152, %c0_153, %c0_154] : memref<1x64x64xf32, #tpu.memory_space<vmem>>, vector<1x64x64xf32>
    %171 = vector.shape_cast %170 : vector<1x64x64xf32> to vector<64x64xf32>
    %172 = vector.shape_cast %169 : vector<64x64xf32> to vector<1x64x64xf32>
    tpu.vector_store %arg18[%c0_152, %c0_153, %c0_154], %172 {strides = array<i32>} : memref<1x64x64xf32, #tpu.memory_space<vmem>>, vector<1x64x64xf32>,
    return
  }
  func.func @transform_0(%arg0: i32) -> (i32, i32, i32) {
    %c0_i32 = arith.constant 0 : i32
    %c0_i32_0 = arith.constant 0 : i32
    %c0_i32_1 = arith.constant 0 : i32
    return %arg0, %c0_i32, %c0_i32_0 : i32, i32, i32
  }
  func.func @transform_1(%arg0: i32) -> (i32, i32) {
    %c0_i32 = arith.constant 0 : i32
    %c0_i32_0 = arith.constant 0 : i32
    %c0_i32_1 = arith.constant 0 : i32
    return %c0_i32, %c0_i32_0 : i32, i32
  }
  func.func @transform_2(%arg0: i32) -> (i32, i32) {
    %c0_i32 = arith.constant 0 : i32
    %c0_i32_0 = arith.constant 0 : i32
    %c0_i32_1 = arith.constant 0 : i32
    return %c0_i32, %c0_i32_0 : i32, i32
  }
  func.func @transform_3(%arg0: i32) -> (i32, i32) {
    %c0_i32 = arith.constant 0 : i32
    %c0_i32_0 = arith.constant 0 : i32
    %c0_i32_1 = arith.constant 0 : i32
    return %c0_i32, %c0_i32_0 : i32, i32
  }
  func.func @transform_4(%arg0: i32) -> (i32, i32) {
    %c0_i32 = arith.constant 0 : i32
    %c0_i32_0 = arith.constant 0 : i32
    %c0_i32_1 = arith.constant 0 : i32
    return %c0_i32, %c0_i32_0 : i32, i32
  }
  func.func @transform_5(%arg0: i32) -> (i32, i32) {
    %c0_i32 = arith.constant 0 : i32
    %c0_i32_0 = arith.constant 0 : i32
    %c0_i32_1 = arith.constant 0 : i32
    return %c0_i32, %c0_i32_0 : i32, i32
  }
  func.func @transform_6(%arg0: i32) -> (i32, i32) {
    %c0_i32 = arith.constant 0 : i32
    %c0_i32_0 = arith.constant 0 : i32
    %c0_i32_1 = arith.constant 0 : i32
    return %c0_i32, %c0_i32_0 : i32, i32
  }
  func.func @transform_7(%arg0: i32) -> (i32, i32) {
    %c0_i32 = arith.constant 0 : i32
    %c0_i32_0 = arith.constant 0 : i32
    %c0_i32_1 = arith.constant 0 : i32
    return %c0_i32, %c0_i32_0 : i32, i32
  }
  func.func @transform_8(%arg0: i32) -> (i32, i32) {
    %c0_i32 = arith.constant 0 : i32
    %c0_i32_0 = arith.constant 0 : i32
    %c0_i32_1 = arith.constant 0 : i32
    return %c0_i32, %c0_i32_0 : i32, i32
  }
  func.func @transform_9(%arg0: i32) -> (i32, i32) {
    %c0_i32 = arith.constant 0 : i32
    %c0_i32_0 = arith.constant 0 : i32
    %c0_i32_1 = arith.constant 0 : i32
    return %c0_i32, %c0_i32_0 : i32, i32
  }
  func.func @transform_10(%arg0: i32) -> (i32, i32) {
    %c0_i32 = arith.constant 0 : i32
    %c0_i32_0 = arith.constant 0 : i32
    %c0_i32_1 = arith.constant 0 : i32
    return %c0_i32, %c0_i32_0 : i32, i32
  }
  func.func @transform_11(%arg0: i32) -> (i32, i32) {
    %c0_i32 = arith.constant 0 : i32
    %c0_i32_0 = arith.constant 0 : i32
    %c0_i32_1 = arith.constant 0 : i32
    return %c0_i32, %c0_i32_0 : i32, i32
  }
  func.func @transform_12(%arg0: i32) -> (i32, i32) {
    %c0_i32 = arith.constant 0 : i32
    %c0_i32_0 = arith.constant 0 : i32
    %c0_i32_1 = arith.constant 0 : i32
    return %c0_i32, %c0_i32_0 : i32, i32
  }
  func.func @transform_13(%arg0: i32) -> (i32, i32) {
    %c0_i32 = arith.constant 0 : i32
    %c0_i32_0 = arith.constant 0 : i32
    %c0_i32_1 = arith.constant 0 : i32
    return %c0_i32, %c0_i32_0 : i32, i32
  }
  func.func @transform_14(%arg0: i32) -> (i32, i32) {
    %c0_i32 = arith.constant 0 : i32
    %c0_i32_0 = arith.constant 0 : i32
    %c0_i32_1 = arith.constant 0 : i32
    return %c0_i32, %c0_i32_0 : i32, i32
  }
  func.func @transform_15(%arg0: i32) -> (i32, i32) {
    %c0_i32 = arith.constant 0 : i32
    %c0_i32_0 = arith.constant 0 : i32
    %c0_i32_1 = arith.constant 0 : i32
    return %c0_i32, %c0_i32_0 : i32, i32
  }
  func.func @transform_16(%arg0: i32) -> (i32, i32) {
    %c0_i32 = arith.constant 0 : i32
    %c0_i32_0 = arith.constant 0 : i32
    %c0_i32_1 = arith.constant 0 : i32
    return %c0_i32, %c0_i32_0 : i32, i32
  }
  func.func @transform_17(%arg0: i32) -> (i32, i32, i32) {
    %c0_i32 = arith.constant 0 : i32
    %c0_i32_0 = arith.constant 0 : i32
    %c0_i32_1 = arith.constant 0 : i32
    return %arg0, %c0_i32, %c0_i32_0 : i32, i32, i32
  }
}

</mosaic_0001>

<bundles_post_ra>
// kernel: bottleneck_forward.1
= control target key start
LH: loop header
LB: loop body
LE: loop exit
PB: predicated region body
PF: predicated region fallthrough
CT: control target
= control target key end

     0   :  { %s3327_s0 = inlined_call_operand.vmem [shape: f32[2,64,64], index: 0, kind: input, shape index: {}]   ;;  %s3328_s1 = inlined_call_operand.vmem [shape: bf16[64,16], index: 1, kind: input, shape index: {}]   ;;  %s3329_s2 = inlined_call_operand.vmem [shape: f32[1,16], index: 2, kind: input, shape index: {}]   ;;  %s3330_s3 = inlined_call_operand.vmem [shape: f32[1,16], index: 3, kind: input, shape index: {}]   ;;  %s3331_s4 = inlined_call_operand.vmem [shape: bf16[144,16], index: 4, kind: input, shape index: {}]   ;;  %s3332_s5 = inlined_call_operand.vmem [shape: f32[1,16], index: 5, kind: input, shape index: {}]   ;;  %s3333_s6 = inlined_call_operand.vmem [shape: f32[1,16], index: 6, kind: input, shape index: {}]   ;;  %s3334_s7 = inlined_call_operand.vmem [shape: bf16[16,64], index: 7, kind: input, shape index: {}]   ;;  %s3335_s8 = inlined_call_operand.vmem [shape: f32[1,64], index: 8, kind: input, shape index: {}]   ;;  %s3336_s9 = inlined_call_operand.vmem [shape: f32[1,64], index: 9, kind: input, shape index: {}]   ;;  %s3337_s10 = inlined_call_operand.vmem [shape: f32[64,64], index: 10, kind: input, shape index: {}]   ;;  %s3338_s11 = inlined_call_operand.vmem [shape: f32[64,64], index: 11, kind: input, shape index: {}]   ;;  %s3339_s12 = inlined_call_operand.vmem [shape: f32[64,64], index: 12, kind: input, shape index: {}]   ;;  %s3340_s13 = inlined_call_operand.vmem [shape: f32[9,64], index: 13, kind: input, shape index: {}]   ;;  %s3341_s14 = inlined_call_operand.vmem [shape: f32[1,64], index: 14, kind: input, shape index: {}]   ;;  %s3342_s15 = inlined_call_operand.vmem [shape: f32[1,64], index: 15, kind: input, shape index: {}]   ;;  %s3343_s16 = inlined_call_operand.vmem [shape: f32[1,64], index: 16, kind: input, shape index: {}]   ;;  %s3344_s17 = inlined_call_operand.hbm [shape: f32[2,64,64], index: 17, kind: output, shape index: {}]  }
   0x1   :  { %3362 = sst [smem:[#allocation19_spill]] %s3327_s0 }
   0x2   :  { %3363 = sst [smem:[#allocation20_spill]] %s3328_s1 }
   0x3   :  { %3364 = sst [smem:[#allocation21_spill]] %s3329_s2 }
   0x4   :  { %3365 = sst [smem:[#allocation22_spill]] %s3330_s3 }
   0x5   :  { %3366 = sst [smem:[#allocation23_spill]] %s3331_s4 }
   0x6   :  { %22 = vsyncpa [#allocation6], 0 }
   0x7   :  { %24 = vsyncpa [#allocation6 + $0x1], 0  ;;  %s2395_s24 = smov 0   ;;  %s2397_s25 = smov 0  }
   0x8   :  { %s2399_s26 = smov 0   ;;  %s2401_s27 = smov 0  }
   0x9 LB: > { %3367 = sst [smem:[#allocation8_spill]] %s2281_s24  ;;  %s2416_s28 = sadd.s32 4294967295, %s2293_s27   ;;  %s2293_s27 = sphi %s2401_s27, %s3395_s27   ;;  %s2289_s26 = sphi %s2399_s26, %s3397_s26   ;;  %s2285_s25 = sphi %s2397_s25, %s3399_s25   ;;  %s2281_s24 = sphi %s2395_s24, %s3398_s24  }
   0xa   : > { %3368 = sst [smem:[#allocation9_spill]] %s2289_s26  ;;  %s2012_s29 = sadd.s32 4294967294, %s2293_s27  }
   0xb   : > { %3369 = sst [smem:[#allocation10_spill]] %s2293_s27  ;;  %s2420_s0 = sadd.s32 1, %s2293_s27  }
   0xc   : > { %3370 = sst [smem:[#allocation11_spill]] %s2420_s0  ;;  %s399_s30 = sadd.s32 1, %s2289_s26 }
   0xd   : > { %s396_s18 = ssub.s32 %s2293_s27, %s2420_s0  ;;  %p409_p0 = scmp.ne.s32.totalorder %s2289_s26, %s2285_s25 }
   0xe   : > { %p397_p1 = scmp.eq.s32.totalorder %s396_s18, 0  ;;  %p410_p2 = scmp.eq.s32.totalorder %s2416_s28, 1 }
   0xf   : > { %p415_p3 = scmp.ne.s32.totalorder %s2285_s25, %s2281_s24  ;;  %p416_p4 = scmp.eq.s32.totalorder %s2012_s29, 1 }
  0x10   : > { %s2431_s19 = scalar_select %p397_p1, %s2289_s26, %s399_s30  }
  0x11   : > { %p2433_p5 = por %p410_p2, %p409_p0  ;;  %p2437_p6 = por %p416_p4, %p415_p3 }
  0x12   : > { %3371 = sst [smem:[#allocation12_spill]] %s2431_s19  ;;  %p2015_p7 = scmp.ge.s32.totalorder %s2293_s27, 1 }
  0x13   : > { %s3372_s1 = scalar_select %p2433_p5, 1, 0 }
  0x14   : > { %s3374_s20 = scalar_select %p2437_p6, 1, 0 }
  0x15   : > { %3373 = sst [smem:[#allocation13_spill]] %s3372_s1  ;;  %p490_p8 = scmp.lt.s32.totalorder %s2293_s27, 3 }
  0x16   : > { %3375 = sst [smem:[#allocation14_spill]] %s3374_s20 }
  0x17   : > { %p491_p9 = pnand %p2015_p7, %p490_p8 }
  0x19   : > { %494 = sbr.rel (%p491_p9) target bundleno = 1075 (0x433), region = 88 }
  0x1e   : > { %s3376_s23 = sld [smem:[#allocation20_spill]]  ;;  %p542_p10 = scmp.lt.s32.totalorder %s2416_s28, 1  ;;  %vm576_vm0 = vcmask 523264   ;;  %vm548_vm1 = vcmask 130048   ;;  %v2295_v10 = vmov 0.0   ;;  %vm550_vm2 = vcmask 123904  }
  0x1f   : > { %s3377_s27 = sld [smem:[#allocation19_spill]]  ;;  %549 = vst.msk [vmem:[#allocation2] sm:$0xff] %vm548_vm1, %v2295_v10  ;;  %vm555_vm3 = vcmask 122880   ;;  %s2296_s24 = smov 16   ;;  %vm746_vm4 = vcmask 125952   ;;  %vm803_vm5 = vcmask 257152  }
  0x20   : > { %s543_s18 = scalar_select %p542_p10, %s2416_s28, 1  ;;  %551 = vst.msk [vmem:[#allocation2 + $0x8] sm:$0x3] %vm550_vm2, %v2295_v10  ;;  %vm860_vm6 = vcmask 388352   ;;  %vm917_vm7 = vcmask 519552   ;;  %vm974_vm8 = vcmask 650752  }
  0x21   : > { %554 = vst.msk [vmem:[#allocation2 + $0x98] sm:$0x3] %vm550_vm2, %v2295_v10  ;;  %s2297_s26 = smov 32   ;;  %s3378_s2 = sld [smem:[#allocation21_spill]]  ;;  %vm1031_vm9 = vcmask 781952   ;;  %vm1089_vm10 = vcmask 913152  }
  0x22   : > { %s2128_s19 = sshll.u32 %s543_s18, 6  ;;  %575 = vst.msk [vmem:[#allocation2 + $0x99] sm:$0x1] %vm555_vm3, %v2295_v10  ;;  %s3379_s3 = sld [smem:[#allocation22_spill]]  ;;  %vm1146_vm11 = vcmask 1044352   ;;  %vm578_vm12 = vcmask 517120  }
  0x23   : > { %556 = vst.msk [vmem:[#allocation2] sm:$0x1] %vm555_vm3, %v2295_v10  ;;  %s3380_s4 = sld [smem:[#allocation23_spill]]  ;;  %s2298_s30 = smov 48   ;;  %vm583_vm13 = vcmask 516096  }
  0x24   : > { %v2132_v0 = vld [vmem:[%s3376_s23 + $0x18] sm:$0xff]  ;;  %v2131_v1 = vld [vmem:[%s3376_s23 + $0x10] sm:$0xff]  ;;  %v2130_v2 = vld [vmem:[%s3376_s23 + $0x8] sm:$0xff]  ;;  %553 = vst.msk [vmem:[#allocation2 + $0x90] sm:$0xff] %vm548_vm1, %v2295_v10  ;;  %s3356_s18 = smov 80   ;;  %s3354_s22 = smov 64  }
  0x25   : > { %664 = vmatpush.bf16.msra.mxu0 %v2132_v0  ;;  %s2457_s21 = scalar_lea.vmem %s3377_s27, %s2128_s19  ;;  %v2129_v3 = vld [vmem:[%s3376_s23] sm:$0xff]  ;;  %557 = vst.msk [vmem:[#allocation2 + $0x10] sm:$0x1] %vm555_vm3, %v2295_v10  ;;  %s2301_s27 = smov 96  }
  0x26   : > { %v2463_v4 = vld [vmem:[%s2457_s21] sm:$0xff]  ;;  %v2466_v5 = vld [vmem:[%s2457_s21 + $0x8] sm:$0xff]  ;;  %v2472_v7 = vld [vmem:[%s2457_s21 + $0x10] sm:$0xff]  ;;  %558 = vst.msk [vmem:[#allocation2 + $0x20] sm:$0x1] %vm555_vm3, %v2295_v10  ;;  %s2302_s0 = smov 112  }
  0x27   : > { %v612_v6 = vpack.c.bf16 %v2466_v5, %v2463_v4  ;;  %v2475_v8 = vld [vmem:[%s2457_s21 + $0x18] sm:$0xff]  ;;  %v2495_v11 = vld [vmem:[%s2457_s21 + $0x20] sm:$0xff]  ;;  %v2498_v12 = vld [vmem:[%s2457_s21 + $0x28] sm:$0xff]  ;;  %559 = vst.msk [vmem:[#allocation2 + $0x30] sm:$0x1] %vm555_vm3, %v2295_v10  ;;  %s3381_s20 = smov 80  }
  0x28   : > { %v613_v9 = vpack.c.bf16 %v2475_v8, %v2472_v7  ;;  %v755_v13 = vld [vmem:[#allocation2 + $0x1] sm:$0xff]  ;;  %560 = vst.msk [vmem:[#allocation2 + $0x40] sm:$0x1] %vm555_vm3, %v2295_v10  ;;  %v614_v15 = vpack.c.bf16 %v2498_v12, %v2495_v11  ;;  %v2537_v18 = vld [vmem:[%s2457_s21 + $0x30] sm:$0xff]  ;;  %v611_v19 = vld [vmem:[%s2457_s21 + $0x38] sm:$0xff]  ;;  %s3382_s29 = smov 64  }
  0x29   : > { %665 = vmatpush.bf16.msra.mxu0 %v2131_v1  ;;  %v763_v14 = vpack.c.bf16 %v755_v13, %v755_v13  ;;  %561 = vst.msk [vmem:[#allocation2 + $0x50] sm:$0x1] %vm555_vm3, %v2295_v10  ;;  %v615_v20 = vpack.c.bf16 %v611_v19, %v2537_v18  ;;  %v2550_v21 = vld [vmem:[%s3378_s2] ss:$0 sm:$0xff]  ;;  %s2151_s19 = sshll.u32 %s2416_s28, 6 }
  0x2a   : > { %562 = vst.msk [vmem:[#allocation2 + $0x60] sm:$0x1] %vm555_vm3, %v2295_v10  ;;  %v2555_v22 = vld [vmem:[%s3379_s3] ss:$0 sm:$0xff]  ;;  %s1946_s28 = scalar_lea.hbm %s3344_s17, %s2151_s19 }
  0x2b   : > { %779 = vrot.lane.b32.xlu0 %v763_v14, %s2296_s24  ;;  %563 = vst.msk [vmem:[#allocation2 + $0x70] sm:$0x1] %vm555_vm3, %v2295_v10  ;;  %v2149_v27 = vld [vmem:[%s3380_s4 + $0x40] sm:$0xff] }
  0x2c   : > { %564 = vst.msk [vmem:[#allocation2 + $0x80] sm:$0x1] %vm555_vm3, %v2295_v10  ;;  %1343 = vmatpush.bf16.msra.mxu2 %v2149_v27 }
  0x2d   : > { %666 = vmatpush.bf16.msra.mxu0 %v2130_v2  ;;  %566 = vst.msk [vmem:[#allocation2 + $0x9] sm:$0x1] %vm555_vm3, %v2295_v10 }
  0x2e   : > { %567 = vst.msk [vmem:[#allocation2 + $0x19] sm:$0x1] %vm555_vm3, %v2295_v10 }
  0x2f   : > { %568 = vst.msk [vmem:[#allocation2 + $0x29] sm:$0x1] %vm555_vm3, %v2295_v10 }
  0x30   : > { %569 = vst.msk [vmem:[#allocation2 + $0x39] sm:$0x1] %vm555_vm3, %v2295_v10 }
  0x31   : > { %667 = vmatpush.bf16.msra.mxu0 %v2129_v3  ;;  %570 = vst.msk [vmem:[#allocation2 + $0x49] sm:$0x1] %vm555_vm3, %v2295_v10 }
  0x32   : > { %571 = vst.msk [vmem:[#allocation2 + $0x59] sm:$0x1] %vm555_vm3, %v2295_v10 }
  0x33   : > { %572 = vst.msk [vmem:[#allocation2 + $0x69] sm:$0x1] %vm555_vm3, %v2295_v10 }
  0x34   : > { %2035 = vmatmul.msk.bf16.vlgmr.msra.gmra.mxu0 %vm576_vm0, %v612_v6  ;;  %573 = vst.msk [vmem:[#allocation2 + $0x79] sm:$0x1] %vm555_vm3, %v2295_v10  ;;  %v812_v16 = vld [vmem:[#allocation2 + $0x2] sm:$0xff] }
  0x35   : > { %574 = vst.msk [vmem:[#allocation2 + $0x89] sm:$0x1] %vm555_vm3, %v2295_v10  ;;  %v820_v17 = vpack.c.bf16 %v812_v16, %v812_v16 }
  0x36   : > { %577 = vst.msk [vmem:[#allocation4] sm:$0xff] %vm576_vm0, %v2295_v10 }
  0x37   : > { %581 = vst.msk [vmem:[#allocation4 + $0x90] sm:$0xff] %vm576_vm0, %v2295_v10  ;;  %836 = vrot.lane.b32.xlu1 %v820_v17, %s2297_s26 }
  0x38   : > { %565 = vst.msk [vmem:[#allocation2 + $0x90] sm:$0x1] %vm555_vm3, %v2295_v10 }
  0x39   : > { %579 = vst.msk [vmem:[#allocation4 + $0x8] sm:$0x3] %vm578_vm12, %v2295_v10 }
  0x3a   : > { %584 = vst.msk [vmem:[#allocation4] sm:$0x1] %vm583_vm13, %v2295_v10 }
  0x3b   : > { %585 = vst.msk [vmem:[#allocation4 + $0x10] sm:$0x1] %vm583_vm13, %v2295_v10 }
  0x3c   : > { %594 = vst.msk [vmem:[#allocation4 + $0x9] sm:$0x1] %vm583_vm13, %v2295_v10 }
  0x3d   : > { %595 = vst.msk [vmem:[#allocation4 + $0x19] sm:$0x1] %vm583_vm13, %v2295_v10 }
  0x3e   : > { %582 = vst.msk [vmem:[#allocation4 + $0x98] sm:$0x3] %vm578_vm12, %v2295_v10 }
  0x3f   : > { %586 = vst.msk [vmem:[#allocation4 + $0x20] sm:$0x1] %vm583_vm13, %v2295_v10 }
  0x40   : > { %587 = vst.msk [vmem:[#allocation4 + $0x30] sm:$0x1] %vm583_vm13, %v2295_v10 }
  0x41   : > { %588 = vst.msk [vmem:[#allocation4 + $0x40] sm:$0x1] %vm583_vm13, %v2295_v10 }
  0x42   : > { %589 = vst.msk [vmem:[#allocation4 + $0x50] sm:$0x1] %vm583_vm13, %v2295_v10 }
  0x43   : > { %590 = vst.msk [vmem:[#allocation4 + $0x60] sm:$0x1] %vm583_vm13, %v2295_v10 }
  0x44   : > { %2036 = vmatmul.msk.bf16.gmra.mxu0 %vm576_vm0, %v613_v9  ;;  %591 = vst.msk [vmem:[#allocation4 + $0x70] sm:$0x1] %vm583_vm13, %v2295_v10 }
  0x45   : > { %592 = vst.msk [vmem:[#allocation4 + $0x80] sm:$0x1] %vm583_vm13, %v2295_v10 }
  0x46   : > { %593 = vst.msk [vmem:[#allocation4 + $0x90] sm:$0x1] %vm583_vm13, %v2295_v10 }
  0x47   : > { %596 = vst.msk [vmem:[#allocation4 + $0x29] sm:$0x1] %vm583_vm13, %v2295_v10 }
  0x48   : > { %597 = vst.msk [vmem:[#allocation4 + $0x39] sm:$0x1] %vm583_vm13, %v2295_v10 }
  0x49   : > { %598 = vst.msk [vmem:[#allocation4 + $0x49] sm:$0x1] %vm583_vm13, %v2295_v10 }
  0x4a   : > { %599 = vst.msk [vmem:[#allocation4 + $0x59] sm:$0x1] %vm583_vm13, %v2295_v10 }
  0x4b   : > { %600 = vst.msk [vmem:[#allocation4 + $0x69] sm:$0x1] %vm583_vm13, %v2295_v10 }
  0x4c   : > { %601 = vst.msk [vmem:[#allocation4 + $0x79] sm:$0x1] %vm583_vm13, %v2295_v10 }
  0x4d   : > { %602 = vst.msk [vmem:[#allocation4 + $0x89] sm:$0x1] %vm583_vm13, %v2295_v10 }
  0x4e   : > { %603 = vst.msk [vmem:[#allocation4 + $0x99] sm:$0x1] %vm583_vm13, %v2295_v10  ;;  %v2860_v10 = vld [vmem:[%s3336_s9] ss:$0 sm:$0xff] }
  0x54   : > { %2037 = vmatmul.msk.bf16.gmra.mxu0 %vm576_vm0, %v614_v15 }
  0x64   : > { %2038 = vmatmul.msk.bf16.gmra.mxu0 %vm576_vm0, %v615_v20 }
  0xb1   : > { %v669_v23 = vpop.f32.mrf.mxu0 }
  0xb2   : > { %v693_v24 = vmul.f32 %v2550_v21, %v669_v23 }
  0xb4   : > { %v705_v25 = vadd.f32 %v2555_v22, %v693_v24 }
  0xb6   : > { %v713_v26 = vmax.f32 %v705_v25, 0.0 }
  0xb8   : > { %722 = vst.msk [vmem:[#allocation2 + $0x11] sm:$0xff] %vm548_vm1, %v713_v26 }
  0xb9   : > { %v671_v28 = vpop.f32.mrf.mxu0 }
  0xba   : > { %v694_v29 = vmul.f32 %v2550_v21, %v671_v28 }
  0xbc   : > { %v706_v30 = vadd.f32 %v2555_v22, %v694_v29 }
  0xbe   : > { %v714_v31 = vmax.f32 %v706_v30, 0.0 }
  0xbf   : > { %v869_v32 = vld [vmem:[#allocation2 + $0x10] sm:$0xff] }
  0xc0   : > { %v813_v33 = vld [vmem:[#allocation2 + $0x12] sm:$0xff]  ;;  %723 = vst.msk [vmem:[#allocation2 + $0x21] sm:$0xff] %vm548_vm1, %v714_v31  ;;  %v877_v35 = vpack.c.bf16 %v869_v32, %v869_v32 }
  0xc1   : > { %v756_v34 = vld [vmem:[#allocation2 + $0x11] sm:$0xff]  ;;  %v821_v36 = vpack.c.bf16 %v813_v33, %v813_v33  ;;  %v674_v38 = vpop.f32.mrf.mxu0 }
  0xc2   : > { %v764_v37 = vpack.c.bf16 %v756_v34, %v756_v34  ;;  %v695_v39 = vmul.f32 %v2550_v21, %v674_v38  ;;  %893 = vrot.lane.b32.xlu2 %v877_v35, %s2298_s30  ;;  %748 = vst.msk [vmem:[#allocation3 + $0x8] sm:$0xf] %vm746_vm4, %v877_v35 }
  0xc3   : > { %838 = vrot.lane.b32.xlu1 %v821_v36, %s2297_s26 }
  0xc4   : > { %781 = vrot.lane.b32.xlu0 %v764_v37, %s2296_s24  ;;  %v707_v40 = vadd.f32 %v2555_v22, %v695_v39 }
  0xc6   : > { %v715_v41 = vmax.f32 %v707_v40, 0.0 }
  0xc7   : > { %v927_v42 = vld [vmem:[#allocation2 + $0x21] sm:$0xff] }
  0xc8   : > { %v984_v43 = vld [vmem:[#allocation2 + $0x22] sm:$0xff]  ;;  %724 = vst.msk [vmem:[#allocation2 + $0x31] sm:$0xff] %vm548_vm1, %v715_v41  ;;  %v935_v45 = vpack.c.bf16 %v927_v42, %v927_v42 }
  0xc9   : > { %v1041_v44 = vld [vmem:[#allocation2 + $0x20] sm:$0xff]  ;;  %v992_v46 = vpack.c.bf16 %v984_v43, %v984_v43  ;;  %v676_v48 = vpop.f32.mrf.mxu0 }
  0xca   : > { %v1049_v47 = vpack.c.bf16 %v1041_v44, %v1041_v44  ;;  %v696_v49 = vmul.f32 %v2550_v21, %v676_v48  ;;  %1007 = vrot.lane.b32.xlu2 %v821_v36, %s3356_s18  ;;  %v837_v48 = vpop.permute.xlu1 %836 }
  0xcb   : > { %952 = vrot.lane.b32.xlu1 %v935_v45, %s3354_s22  ;;  %1171 = vst.msk [vmem:[#allocation3 + $0x4] sm:$0xf] %vm746_vm4, %v992_v46 }
  0xcc   : > { %950 = vrot.lane.b32.xlu0 %v764_v37, %s3354_s22  ;;  %749 = vst.msk [vmem:[#allocation3 + $0x10] sm:$0xf] %vm746_vm4, %v1049_v47  ;;  %v708_v50 = vadd.f32 %v2555_v22, %v696_v49  ;;  %v1162_v49 = vld [vmem:[#allocation2 + $0x92] sm:$0xff] }
  0xce   : > { %v716_v51 = vmax.f32 %v708_v50, 0.0  ;;  %v1170_v50 = vpack.c.bf16 %v1162_v49, %v1162_v49 }
  0xcf   : > { %v1156_v52 = vld [vmem:[#allocation2 + $0x32] sm:$0xff] }
  0xd0   : > { %v1042_v53 = vld [vmem:[#allocation2 + $0x30] sm:$0xff]  ;;  %v1164_v54 = vpack.c.bf16 %v1156_v52, %v1156_v52  ;;  %725 = vst.msk [vmem:[#allocation2 + $0x41] sm:$0xff] %vm548_vm1, %v716_v51 }
  0xd1   : > { %v1050_v55 = vpack.c.bf16 %v1042_v53, %v1042_v53  ;;  %v679_v56 = vpop.f32.mrf.mxu0  ;;  %v1099_v9 = vld [vmem:[#allocation2 + $0x31] sm:$0xff]  ;;  %1178 = vst.msk [vmem:[#allocation3 + $0x3c] sm:$0xf] %vm746_vm4, %v1170_v50 }
  0xd2   : > { %v697_v57 = vmul.f32 %v2550_v21, %v679_v56  ;;  %895 = vrot.lane.b32.xlu2 %v1049_v47, %s2298_s30  ;;  %1172 = vst.msk [vmem:[#allocation3 + $0xc] sm:$0xf] %vm746_vm4, %v1164_v54  ;;  %v2133_v0 = vld [vmem:[#allocation3 + $0x4] sm:$0xf]  ;;  %v1107_v15 = vpack.c.bf16 %v1099_v9, %v1099_v9  ;;  %v2144_v9 = vld [vmem:[%s3380_s4 + $0x18] sm:$0xff] }
  0xd3   : > { %1065 = vrot.lane.b32.xlu1 %v1049_v47, %s2301_s27  ;;  %750 = vst.msk [vmem:[#allocation3 + $0x18] sm:$0xf] %vm746_vm4, %v1050_v55 }
  0xd4   : > { %1009 = vrot.lane.b32.xlu0 %v992_v46, %s3356_s18  ;;  %v709_v58 = vadd.f32 %v2555_v22, %v697_v57 }
  0xd6   : > { %v717_v59 = vmax.f32 %v709_v58, 0.0 }
  0xd7   : > { %v1157_v60 = vld [vmem:[#allocation2 + $0x42] sm:$0xff] }
  0xd8   : > { %v872_v61 = vld [vmem:[#allocation2 + $0x40] sm:$0xff]  ;;  %v2588_v62 = vpack.c.bf16 %v1157_v60, %v1157_v60  ;;  %726 = vst.msk [vmem:[#allocation2 + $0x51] sm:$0xff] %vm548_vm1, %v717_v59  ;;  %v2067_v56 = vld [vmem:[#allocation3 + $0x38] sm:$0xf0] }
  0xd9   : > { %v2591_v63 = vpack.c.bf16 %v872_v61, %v872_v61  ;;  %v2043_v1 = vld [vmem:[#allocation3 + $0x8] sm:$0xf0]  ;;  %v681_v2 = vpop.f32.mrf.mxu0  ;;  %v929_v36 = vld [vmem:[#allocation2 + $0x41] sm:$0xff]  ;;  %v2148_v61 = vld [vmem:[%s3380_s4 + $0x38] sm:$0xff] }
  0xda   : > { %783 = vrot.lane.b32.xlu2 %v935_v45, %s2296_s24  ;;  %v2046_v3 = vor.u32 %v2133_v0, %v2043_v1  ;;  %1173 = vst.msk [vmem:[#allocation3 + $0x14] sm:$0xf] %vm746_vm4, %v2588_v62  ;;  %v698_v6 = vmul.f32 %v2550_v21, %v681_v2  ;;  %v937_v41 = vpack.c.bf16 %v929_v36, %v929_v36  ;;  %v2146_v2 = vld [vmem:[%s3380_s4 + $0x28] sm:$0xff] }
  0xdb   : > { %840 = vrot.lane.b32.xlu1 %v992_v46, %s2297_s26  ;;  %751 = vst.msk [vmem:[#allocation3 + $0x20] sm:$0xf] %vm746_vm4, %v2591_v63  ;;  %1307 = vmatpush.bf16.msra.mxu1 %v2148_v61 }
  0xdc   : > { %1122 = vrot.lane.b32.xlu0 %v935_v45, %s2302_s0  ;;  %2107 = vmatmul.msk.bf16.vlgmr.msra.gmra.mxu2 %vm548_vm1, %v2046_v3  ;;  %v710_v13 = vadd.f32 %v2555_v22, %v698_v6  ;;  %v2145_v3 = vld [vmem:[%s3380_s4 + $0x20] sm:$0xff] }
  0xde   : > { %v718_v14 = vmax.f32 %v710_v13, 0.0  ;;  %v2143_v13 = vld [vmem:[%s3380_s4 + $0x10] sm:$0xff] }
  0xdf   : > { %v1158_v16 = vld [vmem:[#allocation2 + $0x52] sm:$0xff] }
  0xe0   : > { %v2603_v17 = vpack.c.bf16 %v1158_v16, %v1158_v16  ;;  %727 = vst.msk [vmem:[#allocation2 + $0x61] sm:$0xff] %vm548_vm1, %v718_v14  ;;  %v1044_v19 = vld [vmem:[#allocation2 + $0x50] sm:$0xff] }
  0xe1   : > { %v684_v20 = vpop.f32.mrf.mxu0  ;;  %v2606_v23 = vpack.c.bf16 %v1044_v19, %v1044_v19  ;;  %v2135_v28 = vld [vmem:[#allocation3 + $0x14] sm:$0xf]  ;;  %v2142_v19 = vld [vmem:[%s3380_s4 + $0x8] sm:$0xff] }
  0xe2   : > { %1174 = vst.msk [vmem:[#allocation3 + $0x1c] sm:$0xf] %vm746_vm4, %v2603_v17  ;;  %1067 = vrot.lane.b32.xlu2 %v1050_v55, %s2301_s27  ;;  %v699_v24 = vmul.f32 %v2550_v21, %v684_v20  ;;  %v1101_v51 = vld [vmem:[#allocation2 + $0x51] sm:$0xff] }
  0xe3   : > { %1124 = vrot.lane.b32.xlu1 %v1107_v15, %s2302_s0  ;;  %752 = vst.msk [vmem:[#allocation3 + $0x28] sm:$0xf] %vm746_vm4, %v2606_v23  ;;  %v1109_v52 = vpack.c.bf16 %v1101_v51, %v1101_v51 }
  0xe4   : > { %785 = vrot.lane.b32.xlu0 %v1107_v15, %s2296_s24  ;;  %v711_v25 = vadd.f32 %v2555_v22, %v699_v24 }
  0xe6   : > { %v719_v26 = vmax.f32 %v711_v25, 0.0 }
  0xe7   : > { %v1159_v27 = vld [vmem:[#allocation2 + $0x62] sm:$0xff] }
  0xe8   : > { %v874_v29 = vld [vmem:[#allocation2 + $0x60] sm:$0xff]  ;;  %v2617_v30 = vpack.c.bf16 %v1159_v27, %v1159_v27  ;;  %728 = vst.msk [vmem:[#allocation2 + $0x71] sm:$0xff] %vm548_vm1, %v719_v26 }
  0xe9   : > { %v2620_v31 = vpack.c.bf16 %v874_v29, %v874_v29  ;;  %v2051_v32 = vld [vmem:[#allocation3 + $0x18] sm:$0xf0]  ;;  %v686_v34 = vpop.f32.mrf.mxu0  ;;  %v931_v58 = vld [vmem:[#allocation2 + $0x61] sm:$0xff]  ;;  %v1105_v29 = vld [vmem:[#allocation2 + $0x91] sm:$0xff] }
  0xea   : > { %1175 = vst.msk [vmem:[#allocation3 + $0x24] sm:$0xf] %vm746_vm4, %v2617_v30  ;;  %842 = vrot.lane.b32.xlu2 %v1164_v54, %s2297_s26  ;;  %v2054_v33 = vor.u32 %v2135_v28, %v2051_v32  ;;  %v700_v35 = vmul.f32 %v2550_v21, %v686_v34  ;;  %v730_v21 = vld [vmem:[#allocation2] sm:$0xff]  ;;  %v939_v59 = vpack.c.bf16 %v931_v58, %v931_v58 }
  0xeb   : > { %1011 = vrot.lane.b32.xlu1 %v1164_v54, %s3356_s18  ;;  %753 = vst.msk [vmem:[#allocation3 + $0x30] sm:$0xf] %vm746_vm4, %v2620_v31  ;;  %v738_v42 = vpack.c.bf16 %v730_v21, %v730_v21  ;;  %v1113_v34 = vpack.c.bf16 %v1105_v29, %v1105_v29 }
  0xec   : > { %897 = vrot.lane.b32.xlu0 %v1050_v55, %s2298_s30  ;;  %2108 = vmatmul.msk.bf16.gmra.mxu2 %vm548_vm1, %v2054_v33  ;;  %v712_v37 = vadd.f32 %v2555_v22, %v700_v35  ;;  %v780_v22 = vpop.permute.xlu0 %779 }
  0xed   : > { %747 = vst.msk [vmem:[#allocation3] sm:$0xf] %vm746_vm4, %v738_v42 }
  0xee   : > { %v720_v40 = vmax.f32 %v712_v37, 0.0  ;;  %804 = vst.msk [vmem:[#allocation3] sm:$0xf] %vm803_vm5, %v780_v22 }
  0xef   : > { %v1160_v38 = vld [vmem:[#allocation2 + $0x72] sm:$0xff]  ;;  %861 = vst.msk [vmem:[#allocation3] sm:$0xf] %vm860_vm6, %v837_v48 }
  0xf0   : > { %v2632_v39 = vpack.c.bf16 %v1160_v38, %v1160_v38  ;;  %729 = vst.msk [vmem:[#allocation2 + $0x81] sm:$0xff] %vm548_vm1, %v720_v40  ;;  %v1046_v53 = vld [vmem:[#allocation2 + $0x70] sm:$0xff] }
  0xf1   : > { %v2137_v43 = vld [vmem:[#allocation3 + $0x24] sm:$0xf]  ;;  %v1054_v54 = vpack.c.bf16 %v1046_v53, %v1046_v53 }
  0xf2   : > { %1176 = vst.msk [vmem:[#allocation3 + $0x2c] sm:$0xf] %vm746_vm4, %v2632_v39  ;;  %954 = vrot.lane.b32.xlu2 %v1107_v15, %s3354_s22 }
  0xf3   : > { %899 = vrot.lane.b32.xlu1 %v2591_v63, %s2298_s30  ;;  %754 = vst.msk [vmem:[#allocation3 + $0x38] sm:$0xf] %vm746_vm4, %v1054_v54 }
  0xf4   : > { %956 = vrot.lane.b32.xlu0 %v937_v41, %s3354_s22 }
  0xf7   : > { %v1161_v46 = vld [vmem:[#allocation2 + $0x82] sm:$0xff] }
  0xf8   : > { %v2648_v47 = vpack.c.bf16 %v1161_v46, %v1161_v46  ;;  %v1047_v27 = vld [vmem:[#allocation2 + $0x80] sm:$0xff] }
  0xf9   : > { %v2059_v44 = vld [vmem:[#allocation3 + $0x28] sm:$0xf0]  ;;  %v1055_v28 = vpack.c.bf16 %v1047_v27, %v1047_v27 }
  0xfa   : > { %1013 = vrot.lane.b32.xlu2 %v2588_v62, %s3356_s18  ;;  %v2062_v45 = vor.u32 %v2137_v43, %v2059_v44  ;;  %1177 = vst.msk [vmem:[#allocation3 + $0x34] sm:$0xf] %vm746_vm4, %v2648_v47 }
  0xfb   : > { %787 = vrot.lane.b32.xlu1 %v937_v41, %s2296_s24 }
  0xfc   : > { %1069 = vrot.lane.b32.xlu0 %v2591_v63, %s2301_s27  ;;  %2109 = vmatmul.msk.bf16.gmra.mxu2 %vm548_vm1, %v2062_v45  ;;  %v2147_v63 = vld [vmem:[%s3380_s4 + $0x30] sm:$0xff] }
  0xfd   : > { %1308 = vmatpush.bf16.msra.mxu1 %v2147_v63 }
 0x101   : > { %v2139_v55 = vld [vmem:[#allocation3 + $0x34] sm:$0xf]  ;;  %1309 = vmatpush.bf16.msra.mxu1 %v2146_v2 }
 0x102   : > { %1126 = vrot.lane.b32.xlu2 %v937_v41, %s2302_s0  ;;  %v2070_v57 = vor.u32 %v2139_v55, %v2067_v56 }
 0x103   : > { %1071 = vrot.lane.b32.xlu1 %v2606_v23, %s2301_s27 }
 0x104   : > { %844 = vrot.lane.b32.xlu0 %v2588_v62, %s2297_s26  ;;  %v762_v62 = vld [vmem:[#allocation2 + $0x71] sm:$0xff] }
 0x105   : > { %v770_v1 = vpack.c.bf16 %v762_v62, %v762_v62  ;;  %1310 = vmatpush.bf16.msra.mxu1 %v2145_v3 }
 0x109   : > { %1311 = vmatpush.bf16.msra.mxu1 %v2144_v9 }
 0x10a   : > { %789 = vrot.lane.b32.xlu2 %v1109_v52, %s2296_s24 }
 0x10b   : > { %846 = vrot.lane.b32.xlu1 %v2603_v17, %s2297_s26 }
 0x10c   : > { %1128 = vrot.lane.b32.xlu0 %v1109_v52, %s2302_s0  ;;  %2110 = vmatmul.msk.bf16.gmra.mxu2 %vm548_vm1, %v2070_v57 }
 0x10d   : > { %1312 = vmatpush.bf16.msra.mxu1 %v2143_v13 }
 0x111   : > { %1313 = vmatpush.bf16.msra.mxu1 %v2142_v19 }
 0x112   : > { %901 = vrot.lane.b32.xlu2 %v2606_v23, %s2298_s30  ;;  %v2141_v23 = vld [vmem:[%s3380_s4] sm:$0xff] }
 0x113   : > { %958 = vrot.lane.b32.xlu1 %v1109_v52, %s3354_s22 }
 0x114   : > { %1015 = vrot.lane.b32.xlu0 %v2603_v17, %s3356_s18  ;;  %v933_v17 = vld [vmem:[#allocation2 + $0x81] sm:$0xff] }
 0x115   : > { %v941_v20 = vpack.c.bf16 %v933_v17, %v933_v17  ;;  %1314 = vmatpush.bf16.msra.mxu1 %v2141_v23 }
 0x11a   : > { %960 = vrot.lane.b32.xlu2 %v939_v59, %s3354_s22 }
 0x11b   : > { %1017 = vrot.lane.b32.xlu1 %v2617_v30, %s3356_s18 }
 0x11c   : > { %903 = vrot.lane.b32.xlu0 %v2620_v31, %s2298_s30  ;;  %v894_v60 = vpop.permute.xlu2 %893 }
 0x11d   : > { %918 = vst.msk [vmem:[#allocation3] sm:$0xf] %vm917_vm7, %v894_v60 }
 0x122   : > { %1073 = vrot.lane.b32.xlu2 %v2620_v31, %s2301_s27 }
 0x123   : > { %1130 = vrot.lane.b32.xlu1 %v939_v59, %s2302_s0 }
 0x124   : > { %791 = vrot.lane.b32.xlu0 %v939_v59, %s2296_s24  ;;  %v1008_v0 = vpop.permute.xlu2 %1007 }
 0x12a   : > { %848 = vrot.lane.b32.xlu2 %v2617_v30, %s2297_s26  ;;  %v1048_v30 = vld [vmem:[#allocation2 + $0x90] sm:$0xff] }
 0x12b   : > { %793 = vrot.lane.b32.xlu1 %v770_v1, %s2296_s24  ;;  %v1056_v35 = vpack.c.bf16 %v1048_v30, %v1048_v30 }
 0x12c   : > { %1075 = vrot.lane.b32.xlu0 %v1054_v54, %s2301_s27  ;;  %v896_v6 = vpop.permute.xlu2 %895 }
 0x132   : > { %1132 = vrot.lane.b32.xlu2 %v770_v1, %s2302_s0 }
 0x133   : > { %905 = vrot.lane.b32.xlu1 %v1054_v54, %s2298_s30 }
 0x134   : > { %850 = vrot.lane.b32.xlu0 %v2632_v39, %s2297_s26  ;;  %v784_v15 = vpop.permute.xlu2 %783  ;;  %s2251_s26 = scalar_lea.hbm %s3344_s17, 128 }
 0x135   : > { %v839_v14 = vpop.permute.xlu1 %838  ;;  %806 = vst.msk [vmem:[#allocation3 + $0x10] sm:$0xf] %vm803_vm5, %v784_v15 }
 0x136   : > { %v782_v16 = vpop.permute.xlu0 %781 }
 0x137   : > { %805 = vst.msk [vmem:[#allocation3 + $0x8] sm:$0xf] %vm803_vm5, %v782_v16 }
 0x138   : > { %862 = vst.msk [vmem:[#allocation3 + $0x8] sm:$0xf] %vm860_vm6, %v839_v14 }
 0x139   : > { %919 = vst.msk [vmem:[#allocation3 + $0x8] sm:$0xf] %vm917_vm7, %v896_v6 }
 0x13a   : > { %1019 = vrot.lane.b32.xlu2 %v2632_v39, %s3381_s20 }
 0x13b   : > { %964 = vrot.lane.b32.xlu1 %v941_v20, %s3382_s29 }
 0x13c   : > { %962 = vrot.lane.b32.xlu0 %v770_v1, %s3382_s29  ;;  %v1068_v25 = vpop.permute.xlu2 %1067 }
 0x13d   : > { %v953_v24 = vpop.permute.xlu1 %952 }
 0x13e   : > { %v951_v26 = vpop.permute.xlu0 %950  ;;  %976 = vst.msk [vmem:[#allocation3 + $0x8] sm:$0xf] %vm974_vm8, %v953_v24 }
 0x13f   : > { %975 = vst.msk [vmem:[#allocation3] sm:$0xf] %vm974_vm8, %v951_v26 }
 0x140   : > { %1032 = vst.msk [vmem:[#allocation3] sm:$0xf] %vm1031_vm9, %v1008_v0 }
 0x142   : > { %907 = vrot.lane.b32.xlu2 %v1055_v28, %s2298_s30  ;;  %s1949_s30 = sshll.u32 %s1946_s28, 4  ;;  %s1950_s30 = int_to_ptr.hbm [resolvable:$true] %s1949_s30 }
 0x143   : > { %1077 = vrot.lane.b32.xlu1 %v1055_v28, %s2301_s27 }
 0x144   : > { %1021 = vrot.lane.b32.xlu0 %v2648_v47, %s3381_s20  ;;  %v843_v32 = vpop.permute.xlu2 %842 }
 0x145   : > { %v1066_v31 = vpop.permute.xlu1 %1065 }
 0x146   : > { %v1010_v33 = vpop.permute.xlu0 %1009  ;;  %1090 = vst.msk [vmem:[#allocation3] sm:$0xf] %vm1089_vm10, %v1066_v31 }
 0x147   : > { %1033 = vst.msk [vmem:[#allocation3 + $0x8] sm:$0xf] %vm1031_vm9, %v1010_v33 }
 0x148   : > { %1091 = vst.msk [vmem:[#allocation3 + $0x8] sm:$0xf] %vm1089_vm10, %v1068_v25 }
 0x14a   : > { %1079 = vrot.lane.b32.xlu2 %v1056_v35, %s2301_s27 }
 0x14b   : > { %1136 = vrot.lane.b32.xlu1 %v1113_v34, %s2302_s0  ;;  %v2150_v34 = vld [vmem:[%s3334_s7] sm:$0xff] }
 0x14c   : > { %1134 = vrot.lane.b32.xlu0 %v941_v20, %s2302_s0  ;;  %v955_v37 = vpop.permute.xlu2 %954  ;;  %1428 = vmatpush.bf16.msra.mxu3 %v2150_v34  ;;  %s539_s0 = sand.u32 1, %s2285_s25  }
 0x14d   : > { %v841_v36 = vpop.permute.xlu1 %840  ;;  %s2016_s18 = sshll.u32 %s539_s0, 6  ;;  %s1935_s27 = scalar_lea.sflag [#allocation6], %s539_s0 }
 0x14e   : > { %v1123_v38 = vpop.permute.xlu0 %1122  ;;  %863 = vst.msk [vmem:[#allocation3 + $0x10] sm:$0xf] %vm860_vm6, %v841_v36  ;;  %s541_s20 = scalar_lea.vmem [#allocation5], %s2016_s18  ;;  %s2245_s18 = sshra.s32 %s1950_s30, 4  ;;  %s2246_s18 = int_to_ptr.hbm [resolvable:$true] %s2245_s18 }
 0x14f   : > { %1147 = vst.msk [vmem:[#allocation3] sm:$0xf] %vm1146_vm11, %v1123_v38  ;;  %v2783_v38 = vld [vmem:[%s3332_s5] ss:$0 sm:$0xff]  ;;  %s1947_s29 = sshll.u32 %s541_s20, 4  ;;  %s2247_s22 = scalar_lea.hbm %s2246_s18, 64  ;;  %s1948_s29 = int_to_ptr.vmem [resolvable:$true] %s1947_s29 }
 0x150   : > { %p2248_p11 = scmp.ne.s32.totalorder %s2246_s18, %s2247_s22  ;;  %p2252_p0 = scmp.lt.s32.totalorder %s2246_s18, %s3344_s17 }
 0x151   : > { %p2253_p1 = scmp.lt.s32.totalorder %s2251_s26, %s2247_s22 }
 0x152   : > { %p2249_p12 = pnand %p2248_p11, %p2433_p5 }
 0x153   : > { %p2254_p2 = por %p2253_p1, %p2252_p0 }
 0x154   : > { %v1014_v40 = vpop.permute.xlu2 %1013  ;;  %p2250_p13 = pneg %p2249_p12 }
 0x155   : > { %v1125_v39 = vpop.permute.xlu1 %1124 }
 0x156   : > { %1148 = vst.msk [vmem:[#allocation3 + $0x8] sm:$0xf] %vm1146_vm11, %v1125_v39  ;;  %v786_v41 = vpop.permute.xlu0 %785  ;;  %v2041_v42 = vld [vmem:[#allocation3] sm:$0xf]  ;;  %p2255_p3 = pnand %p2254_p2, %p2250_p13 }
 0x157   : > { %807 = vst.msk [vmem:[#allocation3 + $0x18] sm:$0xf] %vm803_vm5, %v786_v41 }
 0x158   : > { %864 = vst.msk [vmem:[#allocation3 + $0x18] sm:$0xf] %vm860_vm6, %v843_v32 }
 0x15c   : > { %v1127_v22 = vpop.permute.xlu2 %1126 }
 0x15d   : > { %v1012_v21 = vpop.permute.xlu1 %1011  ;;  %v2134_v43 = vld [vmem:[#allocation3 + $0x4] sm:$0xf0] }
 0x15e   : > { %v898_v44 = vpop.permute.xlu0 %897  ;;  %v2042_v45 = vor.u32 %v2134_v43, %v2041_v42 }
 0x15f   : > { %920 = vst.msk [vmem:[#allocation3 + $0x10] sm:$0xf] %vm917_vm7, %v898_v44  ;;  %v1345_v35 = vpop.f32.mrf.mxu2 }
 0x160   : > { %977 = vst.msk [vmem:[#allocation3 + $0x10] sm:$0xf] %vm974_vm8, %v955_v37  ;;  %1315 = vmatmul.bf16.vlgmr.msra.gmra.mxu1 %v2042_v45 }
 0x161   : > { %1034 = vst.msk [vmem:[#allocation3 + $0x10] sm:$0xf] %vm1031_vm9, %v1012_v21 }
 0x164   : > { %v790_v47 = vpop.permute.xlu2 %789 }
 0x165   : > { %v900_v46 = vpop.permute.xlu1 %899  ;;  %809 = vst.msk [vmem:[#allocation3 + $0x28] sm:$0xf] %vm803_vm5, %v790_v47 }
 0x166   : > { %v957_v48 = vpop.permute.xlu0 %956  ;;  %921 = vst.msk [vmem:[#allocation3 + $0x18] sm:$0xf] %vm917_vm7, %v900_v46 }
 0x167   : > { %978 = vst.msk [vmem:[#allocation3 + $0x18] sm:$0xf] %vm974_vm8, %v957_v48  ;;  %v1347_v41 = vpop.f32.mrf.mxu2 }
 0x168   : > { %1035 = vst.msk [vmem:[#allocation3 + $0x18] sm:$0xf] %vm1031_vm9, %v1014_v40  ;;  %v2789_v40 = vld [vmem:[%s3333_s6] ss:$0 sm:$0xff] }
 0x16c   : > { %v902_v50 = vpop.permute.xlu2 %901 }
 0x16d   : > { %v788_v49 = vpop.permute.xlu1 %787 }
 0x16e   : > { %v1070_v51 = vpop.permute.xlu0 %1069  ;;  %808 = vst.msk [vmem:[#allocation3 + $0x20] sm:$0xf] %vm803_vm5, %v788_v49 }
 0x16f   : > { %1092 = vst.msk [vmem:[#allocation3 + $0x10] sm:$0xf] %vm1089_vm10, %v1070_v51  ;;  %v1350_v48 = vpop.f32.mrf.mxu2 }
 0x170   : > { %1149 = vst.msk [vmem:[#allocation3 + $0x10] sm:$0xf] %vm1146_vm11, %v1127_v22 }
 0x174   : > { %v961_v53 = vpop.permute.xlu2 %960 }
 0x175   : > { %v1072_v52 = vpop.permute.xlu1 %1071 }
 0x176   : > { %v845_v54 = vpop.permute.xlu0 %844  ;;  %1093 = vst.msk [vmem:[#allocation3 + $0x18] sm:$0xf] %vm1089_vm10, %v1072_v52 }
 0x177   : > { %865 = vst.msk [vmem:[#allocation3 + $0x20] sm:$0xf] %vm860_vm6, %v845_v54  ;;  %v2049_v60 = vld [vmem:[#allocation3 + $0x10] sm:$0xf]  ;;  %v1352_v52 = vpop.f32.mrf.mxu2 }
 0x178   : > { %922 = vst.msk [vmem:[#allocation3 + $0x20] sm:$0xf] %vm917_vm7, %v902_v50 }
 0x17c   : > { %v1074_v57 = vpop.permute.xlu2 %1073 }
 0x17d   : > { %v847_v55 = vpop.permute.xlu1 %846 }
 0x17e   : > { %v1129_v56 = vpop.permute.xlu0 %1128  ;;  %866 = vst.msk [vmem:[#allocation3 + $0x28] sm:$0xf] %vm860_vm6, %v847_v55 }
 0x17f   : > { %1150 = vst.msk [vmem:[#allocation3 + $0x18] sm:$0xf] %vm1146_vm11, %v1129_v56 }
 0x184   : > { %v849_v63 = vpop.permute.xlu2 %848 }
 0x185   : > { %v959_v58 = vpop.permute.xlu1 %958 }
 0x186   : > { %v1016_v59 = vpop.permute.xlu0 %1015  ;;  %979 = vst.msk [vmem:[#allocation3 + $0x20] sm:$0xf] %vm974_vm8, %v959_v58  ;;  %v2136_v61 = vld [vmem:[#allocation3 + $0x14] sm:$0xf0] }
 0x187   : > { %1036 = vst.msk [vmem:[#allocation3 + $0x20] sm:$0xf] %vm1031_vm9, %v1016_v59  ;;  %v2050_v62 = vor.u32 %v2136_v61, %v2049_v60  ;;  %v1355_v61 = vpop.f32.mrf.mxu2 }
 0x188   : > { %1094 = vst.msk [vmem:[#allocation3 + $0x20] sm:$0xf] %vm1089_vm10, %v1074_v57 }
 0x189   : > { %1320 = vmatmul.bf16.gmra.mxu1 %v2050_v62 }
 0x18c   : > { %v1133_v2 = vpop.permute.xlu2 %1132 }
 0x18d   : > { %v1018_v0 = vpop.permute.xlu1 %1017 }
 0x18e   : > { %v904_v1 = vpop.permute.xlu0 %903 }
 0x18f   : > { %923 = vst.msk [vmem:[#allocation3 + $0x28] sm:$0xf] %vm917_vm7, %v904_v1  ;;  %v1357_v1 = vpop.f32.mrf.mxu2 }
 0x190   : > { %980 = vst.msk [vmem:[#allocation3 + $0x28] sm:$0xf] %vm974_vm8, %v961_v53 }
 0x191   : > { %1037 = vst.msk [vmem:[#allocation3 + $0x28] sm:$0xf] %vm1031_vm9, %v1018_v0 }
 0x194   : > { %v1020_v9 = vpop.permute.xlu2 %1019 }
 0x195   : > { %v1131_v3 = vpop.permute.xlu1 %1130 }
 0x196   : > { %1151 = vst.msk [vmem:[#allocation3 + $0x20] sm:$0xf] %vm1146_vm11, %v1131_v3  ;;  %v792_v6 = vpop.permute.xlu0 %791 }
 0x197   : > { %810 = vst.msk [vmem:[#allocation3 + $0x30] sm:$0xf] %vm803_vm5, %v792_v6 }
 0x198   : > { %867 = vst.msk [vmem:[#allocation3 + $0x30] sm:$0xf] %vm860_vm6, %v849_v63 }
 0x19c   : > { %v908_v17 = vpop.permute.xlu2 %907 }
 0x19d   : > { %v794_v13 = vpop.permute.xlu1 %793  ;;  %v2057_v19 = vld [vmem:[#allocation3 + $0x20] sm:$0xf] }
 0x19e   : > { %v1076_v14 = vpop.permute.xlu0 %1075  ;;  %811 = vst.msk [vmem:[#allocation3 + $0x38] sm:$0xf] %vm803_vm5, %v794_v13 }
 0x19f   : > { %1095 = vst.msk [vmem:[#allocation3 + $0x28] sm:$0xf] %vm1089_vm10, %v1076_v14 }
 0x1a0   : > { %1152 = vst.msk [vmem:[#allocation3 + $0x28] sm:$0xf] %vm1146_vm11, %v1133_v2 }
 0x1a4   : > { %v1080_v27 = vpop.permute.xlu2 %1079 }
 0x1a5   : > { %v906_v15 = vpop.permute.xlu1 %905 }
 0x1a6   : > { %v851_v16 = vpop.permute.xlu0 %850  ;;  %924 = vst.msk [vmem:[#allocation3 + $0x30] sm:$0xf] %vm917_vm7, %v906_v15 }
 0x1a7   : > { %868 = vst.msk [vmem:[#allocation3 + $0x38] sm:$0xf] %vm860_vm6, %v851_v16  ;;  %v2138_v20 = vld [vmem:[#allocation3 + $0x24] sm:$0xf0] }
 0x1a8   : > { %925 = vst.msk [vmem:[#allocation3 + $0x38] sm:$0xf] %vm917_vm7, %v908_v17  ;;  %v2058_v23 = vor.u32 %v2138_v20, %v2057_v19  ;;  %v1360_v17 = vpop.f32.mrf.mxu2 }
 0x1aa   : > { %1325 = vmatmul.bf16.gmra.mxu1 %v2058_v23 }
 0x1ad   : > { %v965_v24 = vpop.permute.xlu1 %964 }
 0x1ae   : > { %v963_v25 = vpop.permute.xlu0 %962  ;;  %982 = vst.msk [vmem:[#allocation3 + $0x38] sm:$0xf] %vm974_vm8, %v965_v24 }
 0x1af   : > { %981 = vst.msk [vmem:[#allocation3 + $0x30] sm:$0xf] %vm974_vm8, %v963_v25 }
 0x1b0   : > { %1038 = vst.msk [vmem:[#allocation3 + $0x30] sm:$0xf] %vm1031_vm9, %v1020_v9  ;;  %v1362_v24 = vpop.f32.mrf.mxu2 }
 0x1b5   : > { %v1078_v26 = vpop.permute.xlu1 %1077 }
 0x1b6   : > { %v1022_v28 = vpop.permute.xlu0 %1021  ;;  %1096 = vst.msk [vmem:[#allocation3 + $0x30] sm:$0xf] %vm1089_vm10, %v1078_v26 }
 0x1b7   : > { %1039 = vst.msk [vmem:[#allocation3 + $0x38] sm:$0xf] %vm1031_vm9, %v1022_v28 }
 0x1b8   : > { %1097 = vst.msk [vmem:[#allocation3 + $0x38] sm:$0xf] %vm1089_vm10, %v1080_v27 }
 0x1bd   : > { %v1137_v29 = vpop.permute.xlu1 %1136 }
 0x1be   : > { %v1135_v30 = vpop.permute.xlu0 %1134  ;;  %1154 = vst.msk [vmem:[#allocation3 + $0x38] sm:$0xf] %vm1146_vm11, %v1137_v29 }
 0x1bf   : > { %1153 = vst.msk [vmem:[#allocation3 + $0x30] sm:$0xf] %vm1146_vm11, %v1135_v30 }
 0x1c5   : > { %v2140_v31 = vld [vmem:[#allocation3 + $0x34] sm:$0xf0] }
 0x1c6   : > { %v2065_v32 = vld [vmem:[#allocation3 + $0x30] sm:$0xf] }
 0x1c7   : > { %v2066_v33 = vor.u32 %v2140_v31, %v2065_v32 }
 0x1c9   : > { %1330 = vmatmul.bf16.gmra.mxu1 %v2066_v33  ;;  %v2855_v33 = vld [vmem:[%s3335_s8] ss:$0 sm:$0xff] }
 0x1dd   : > { %v1316_v36 = vpop.f32.mrf.mxu1 }
 0x1de   : > { %v1346_v37 = vadd.f32 %v1345_v35, %v1316_v36 }
 0x1e0   : > { %v1369_v39 = vmul.f32 %v2783_v38, %v1346_v37 }
 0x1e2   : > { %v1381_v42 = vadd.f32 %v2789_v40, %v1369_v39 }
 0x1e4   : > { %v1389_v45 = vmax.f32 %v1381_v42, 0.0 }
 0x1e5   : > { %v1318_v21 = vpop.f32.mrf.mxu1 }
 0x1e6   : > { %v1348_v22 = vadd.f32 %v1347_v41, %v1318_v21 }
 0x1e8   : > { %v1370_v43 = vmul.f32 %v2783_v38, %v1348_v22 }
 0x1ea   : > { %v1382_v44 = vadd.f32 %v2789_v40, %v1370_v43  ;;  %v1549_v43 = vld [vmem:[%s3338_s11 + $0x38] sm:$0xff] }
 0x1eb   : > { %1558 = vmatpush.msrb.mxu3 %v1549_v43  ;;  %v1572_v43 = vld [vmem:[%s3339_s12 + $0x8] sm:$0xff] }
 0x1ec   : > { %v1390_v46 = vmax.f32 %v1382_v44, 0.0 }
 0x1ee   : > { %v1397_v47 = vpack.c.bf16 %v1390_v46, %v1389_v45 }
 0x1f0   : > { %2115 = vmatmul.msk.bf16.vlgmr.msra.gmra.mxu3 %vm548_vm1, %v1397_v47 }
 0x206   : > { %v1321_v49 = vpop.f32.mrf.mxu1 }
 0x207   : > { %v1351_v50 = vadd.f32 %v1350_v48, %v1321_v49 }
 0x209   : > { %v1371_v51 = vmul.f32 %v2783_v38, %v1351_v50 }
 0x20b   : > { %v1383_v55 = vadd.f32 %v2789_v40, %v1371_v51 }
 0x20d   : > { %v1391_v58 = vmax.f32 %v1383_v55, 0.0  ;;  %v1515_v55 = vld [vmem:[%s3337_s10 + $0x20] sm:$0xff] }
 0x20e   : > { %v1323_v53 = vpop.f32.mrf.mxu1 }
 0x20f   : > { %v1353_v54 = vadd.f32 %v1352_v52, %v1323_v53  ;;  %v1548_v52 = vld [vmem:[%s3338_s11 + $0x30] sm:$0xff] }
 0x210   : > { %1559 = vmatpush.msrb.mxu3 %v1548_v52 }
 0x211   : > { %v1372_v56 = vmul.f32 %v2783_v38, %v1353_v54  ;;  %v1547_v54 = vld [vmem:[%s3338_s11 + $0x28] sm:$0xff] }
 0x212   : > { %1560 = vmatpush.msrb.mxu3 %v1547_v54 }
 0x213   : > { %v1384_v57 = vadd.f32 %v2789_v40, %v1372_v56 }
 0x215   : > { %v1392_v59 = vmax.f32 %v1384_v57, 0.0  ;;  %v1546_v57 = vld [vmem:[%s3338_s11 + $0x20] sm:$0xff] }
 0x216   : > { %1561 = vmatpush.msrb.mxu3 %v1546_v57  ;;  %v3015_v57 = vld [vmem:[%s3340_s13] ss:$0 sm:$0xff] }
 0x217   : > { %v1398_v60 = vpack.c.bf16 %v1392_v59, %v1391_v58 }
 0x219   : > { %2116 = vmatmul.msk.bf16.gmra.mxu3 %vm548_vm1, %v1398_v60 }
 0x227   : > { %v1326_v62 = vpop.f32.mrf.mxu1 }
 0x228   : > { %v1356_v63 = vadd.f32 %v1355_v61, %v1326_v62 }
 0x22a   : > { %v1373_v0 = vmul.f32 %v2783_v38, %v1356_v63 }
 0x22c   : > { %v1385_v6 = vadd.f32 %v2789_v40, %v1373_v0 }
 0x22e   : > { %v1393_v14 = vmax.f32 %v1385_v6, 0.0  ;;  %v1512_v6 = vld [vmem:[%s3337_s10 + $0x8] sm:$0xff] }
 0x22f   : > { %v1328_v2 = vpop.f32.mrf.mxu1 }
 0x230   : > { %v1358_v3 = vadd.f32 %v1357_v1, %v1328_v2  ;;  %v1545_v2 = vld [vmem:[%s3338_s11 + $0x18] sm:$0xff] }
 0x231   : > { %1562 = vmatpush.msrb.mxu3 %v1545_v2 }
 0x232   : > { %v1374_v9 = vmul.f32 %v2783_v38, %v1358_v3  ;;  %v1513_v3 = vld [vmem:[%s3337_s10 + $0x10] sm:$0xff] }
 0x234   : > { %v1386_v13 = vadd.f32 %v2789_v40, %v1374_v9  ;;  %v1543_v9 = vld [vmem:[%s3338_s11 + $0x8] sm:$0xff] }
 0x236   : > { %v1394_v15 = vmax.f32 %v1386_v13, 0.0 }
 0x238   : > { %v1399_v16 = vpack.c.bf16 %v1394_v15, %v1393_v14  ;;  %v1511_v14 = vld [vmem:[%s3337_s10] sm:$0xff] }
 0x239   : > { %v1542_v15 = vld [vmem:[%s3338_s11] sm:$0xff] }
 0x23a   : > { %2117 = vmatmul.msk.bf16.gmra.mxu3 %vm548_vm1, %v1399_v16 }
 0x246   : > { %v1331_v19 = vpop.f32.mrf.mxu1 }
 0x247   : > { %v1361_v20 = vadd.f32 %v1360_v17, %v1331_v19 }
 0x249   : > { %v1375_v23 = vmul.f32 %v2783_v38, %v1361_v20 }
 0x24b   : > { %v1387_v27 = vadd.f32 %v2789_v40, %v1375_v23  ;;  %v1578_v23 = vld [vmem:[%s3339_s12 + $0x38] sm:$0xff] }
 0x24c   : > { %1590 = vmatpush.msrb.mxu0 %v1578_v23 }
 0x24d   : > { %v1395_v30 = vmax.f32 %v1387_v27, 0.0 }
 0x24e   : > { %v1333_v25 = vpop.f32.mrf.mxu1 }
 0x24f   : > { %v1363_v26 = vadd.f32 %v1362_v24, %v1333_v25  ;;  %v1577_v24 = vld [vmem:[%s3339_s12 + $0x30] sm:$0xff] }
 0x250   : > { %1591 = vmatpush.msrb.mxu0 %v1577_v24 }
 0x251   : > { %v1376_v28 = vmul.f32 %v2783_v38, %v1363_v26 }
 0x253   : > { %v1388_v29 = vadd.f32 %v2789_v40, %v1376_v28 }
 0x255   : > { %v1396_v31 = vmax.f32 %v1388_v29, 0.0 }
 0x257   : > { %v1400_v32 = vpack.c.bf16 %v1396_v31, %v1395_v30 }
 0x259   : > { %2118 = vmatmul.msk.bf16.gmra.mxu3 %vm548_vm1, %v1400_v32  ;;  %v1575_v32 = vld [vmem:[%s3339_s12 + $0x20] sm:$0xff] }
 0x273   : > { %v1430_v34 = vpop.f32.mrf.mxu3 }
 0x274   : > { %v1454_v35 = vmul.f32 %v2855_v33, %v1430_v34 }
 0x276   : > { %v1466_v36 = vadd.f32 %v2860_v10, %v1454_v35 }
 0x278   : > { %v1474_v37 = vadd.f32 %v1466_v36, %v2463_v4  ;;  %v1518_v4 = vld [vmem:[%s3337_s10 + $0x38] sm:$0xff] }
 0x279   : > { %1530 = vmatpush.msrb.mxu2 %v1518_v4 }
 0x27a   : > { %v2865_v38 = vmax.f32 %v1474_v37, 0.0  ;;  %v1574_v37 = vld [vmem:[%s3339_s12 + $0x18] sm:$0xff] }
 0x27b   : > { %v1432_v39 = vpop.f32.mrf.mxu3 }
 0x27c   : > { %1622 = vst.msk [vmem:[#allocation4 + $0x11] sm:$0xff] %vm576_vm0, %v2865_v38  ;;  %v1455_v40 = vmul.f32 %v2855_v33, %v1432_v39  ;;  %v1490_v25 = vsel %vm576_vm0, %v2865_v38, 0.0 }
 0x27e   : > { %v1467_v41 = vadd.f32 %v2860_v10, %v1455_v40  ;;  %v2989_v40 = vld [vmem:[%s2457_s21 + $0x38] sm:$0xff] }
 0x280   : > { %v1475_v21 = vadd.f32 %v1467_v41, %v2466_v5 }
 0x282   : > { %v2872_v22 = vmax.f32 %v1475_v21, 0.0  ;;  %v1573_v21 = vld [vmem:[%s3339_s12 + $0x10] sm:$0xff] }
 0x283   : > { %v1683_v23 = vld [vmem:[#allocation4 + $0x12] sm:$0xff] }
 0x284   : > { %1623 = vst.msk [vmem:[#allocation4 + $0x21] sm:$0xff] %vm576_vm0, %v2872_v22  ;;  %v1491_v19 = vsel %vm576_vm0, %v2872_v22, 0.0 }
 0x285   : > { %v1492_v28 = vadd.f32 %v1491_v19, %v1490_v25 }
 0x28b   : > { %v1632_v25 = vld [vmem:[#allocation4 + $0x20] sm:$0xff] }
 0x29c   : > { %v1435_v42 = vpop.f32.mrf.mxu3 }
 0x29d   : > { %v1456_v44 = vmul.f32 %v2855_v33, %v1435_v42 }
 0x29f   : > { %v1468_v5 = vadd.f32 %v2860_v10, %v1456_v44 }
 0x2a1   : > { %v1476_v45 = vadd.f32 %v1468_v5, %v2472_v7  ;;  %v1517_v7 = vld [vmem:[%s3337_s10 + $0x30] sm:$0xff]  ;;  %v1571_v5 = vld [vmem:[%s3339_s12] sm:$0xff] }
 0x2a2   : > { %1531 = vmatpush.msrb.mxu2 %v1517_v7 }
 0x2a3   : > { %v2885_v46 = vmax.f32 %v1476_v45, 0.0 }
 0x2a4   : > { %v1437_v47 = vpop.f32.mrf.mxu3 }
 0x2a5   : > { %1624 = vst.msk [vmem:[#allocation4 + $0x31] sm:$0xff] %vm576_vm0, %v2885_v46  ;;  %v1457_v48 = vmul.f32 %v2855_v33, %v1437_v47  ;;  %v1493_v26 = vsel %vm576_vm0, %v2885_v46, 0.0 }
 0x2a6   : > { %v1494_v34 = vadd.f32 %v1493_v26, %v1492_v28  ;;  %v3052_v26 = vld [vmem:[%s3340_s13 + $0x6] ss:$0 sm:$0xff] }
 0x2a7   : > { %v1469_v49 = vadd.f32 %v2860_v10, %v1457_v48 }
 0x2a9   : > { %v1477_v50 = vadd.f32 %v1469_v49, %v2475_v8  ;;  %v1516_v8 = vld [vmem:[%s3337_s10 + $0x28] sm:$0xff] }
 0x2aa   : > { %1532 = vmatpush.msrb.mxu2 %v1516_v8 }
 0x2ab   : > { %v2892_v51 = vmax.f32 %v1477_v50, 0.0 }
 0x2ac   : > { %1533 = vmatpush.msrb.mxu2 %v1515_v55 }
 0x2ad   : > { %1625 = vst.msk [vmem:[#allocation4 + $0x41] sm:$0xff] %vm576_vm0, %v2892_v51  ;;  %v1495_v30 = vsel %vm576_vm0, %v2892_v51, 0.0 }
 0x2ae   : > { %v1496_v39 = vadd.f32 %v1495_v30, %v1494_v34  ;;  %v1658_v34 = vld [vmem:[#allocation4 + $0x21] sm:$0xff] }
 0x2bd   : > { %v1440_v53 = vpop.f32.mrf.mxu3 }
 0x2be   : > { %v1458_v56 = vmul.f32 %v2855_v33, %v1440_v53 }
 0x2c0   : > { %v1470_v58 = vadd.f32 %v2860_v10, %v1458_v56 }
 0x2c2   : > { %v1478_v59 = vadd.f32 %v1470_v58, %v2495_v11  ;;  %v1514_v11 = vld [vmem:[%s3337_s10 + $0x18] sm:$0xff]  ;;  %v3020_v58 = vld [vmem:[%s3340_s13 + $0x1] ss:$0 sm:$0xff] }
 0x2c3   : > { %1534 = vmatpush.msrb.mxu2 %v1514_v11  ;;  %v1682_v11 = vld [vmem:[#allocation4 + $0x2] sm:$0xff] }
 0x2c4   : > { %v2917_v60 = vmax.f32 %v1478_v59, 0.0  ;;  %v1630_v59 = vld [vmem:[#allocation4] sm:$0xff] }
 0x2c5   : > { %v1442_v61 = vpop.f32.mrf.mxu3  ;;  %1535 = vmatpush.msrb.mxu2 %v1513_v3 }
 0x2c6   : > { %3383 = vst [vmem:[#allocation15_spill] sm:$0xff] %v2917_v60  ;;  %v1459_v62 = vmul.f32 %v2855_v33, %v1442_v61  ;;  %v1497_v35 = vsel %vm576_vm0, %v2917_v60, 0.0  ;;  %v1656_v61 = vld [vmem:[#allocation4 + $0x1] sm:$0xff] }
 0x2c7   : > { %1626 = vst.msk [vmem:[#allocation4 + $0x51] sm:$0xff] %vm576_vm0, %v2917_v60  ;;  %1536 = vmatpush.msrb.mxu2 %v1512_v6  ;;  %v1498_v42 = vadd.f32 %v1497_v35, %v1496_v39  ;;  %v1631_v6 = vld [vmem:[#allocation4 + $0x10] sm:$0xff]  ;;  %v1797_v35 = vmul.f32 %v3052_v26, %v1632_v25  ;;  %v3066_v39 = vld [vmem:[%s3340_s13 + $0x7] ss:$0 sm:$0xff] }
 0x2c8   : > { %v1471_v63 = vadd.f32 %v2860_v10, %v1459_v62  ;;  %v1640_v62 = vmul.f32 %v3015_v57, %v1630_v59 }
 0x2c9   : > { %1537 = vmatpush.msrb.mxu2 %v1511_v14 }
 0x2ca   : > { %v1479_v0 = vadd.f32 %v1471_v63, %v2498_v12  ;;  %v1544_v12 = vld [vmem:[%s3338_s11 + $0x10] sm:$0xff]  ;;  %v1666_v63 = vmul.f32 %v3020_v58, %v1656_v61  ;;  %v2228_v61 = vld [vmem:[%s2457_s21 + $0x20] sm:$0xff] }
 0x2cb   : > { %1563 = vmatpush.msrb.mxu3 %v1544_v12  ;;  %v3033_v12 = vld [vmem:[%s3340_s13 + $0x3] ss:$0 sm:$0xff] }
 0x2cc   : > { %v2924_v1 = vmax.f32 %v1479_v0, 0.0  ;;  %v3027_v0 = vld [vmem:[%s3340_s13 + $0x2] ss:$0 sm:$0xff]  ;;  %v1674_v2 = vadd.f32 %v1666_v63, %v1640_v62  ;;  %v1718_v14 = vmul.f32 %v3033_v12, %v1631_v6  ;;  %v1719_v30 = vmul.f32 %v3033_v12, %v1632_v25  ;;  %v2229_v63 = vld [vmem:[%s2457_s21 + $0x28] sm:$0xff] }
 0x2cd   : > { %1564 = vmatpush.msrb.mxu3 %v1543_v9  ;;  %v1692_v3 = vmul.f32 %v3027_v0, %v1682_v11  ;;  %v1657_v9 = vld [vmem:[#allocation4 + $0x11] sm:$0xff] }
 0x2ce   : > { %3384 = vst [vmem:[#allocation16_spill] sm:$0xff] %v2924_v1 }
 0x2cf   : > { %1627 = vst.msk [vmem:[#allocation4 + $0x61] sm:$0xff] %vm576_vm0, %v2924_v1  ;;  %1565 = vmatpush.msrb.mxu3 %v1542_v15  ;;  %v3039_v15 = vld [vmem:[%s3340_s13 + $0x4] ss:$0 sm:$0xff] }
 0x2d0   : > { %v1744_v24 = vmul.f32 %v3039_v15, %v1657_v9 }
 0x2dc   : > { %v1445_v13 = vpop.f32.mrf.mxu3 }
 0x2dd   : > { %v1460_v16 = vmul.f32 %v2855_v33, %v1445_v13  ;;  %v1700_v13 = vadd.f32 %v1692_v3, %v1674_v2  ;;  %v1823_v3 = vmul.f32 %v3066_v39, %v1658_v34 }
 0x2df   : > { %v1472_v17 = vadd.f32 %v2860_v10, %v1460_v16  ;;  %v1641_v16 = vmul.f32 %v3015_v57, %v1631_v6  ;;  %v1726_v19 = vadd.f32 %v1718_v14, %v1700_v13  ;;  %v3114_v6 = vld [vmem:[#allocation4 + $0x40] sm:$0xff]  ;;  %v3118_v13 = vld [vmem:[#allocation4 + $0x50] sm:$0xff] }
 0x2e1   : > { %v1480_v20 = vadd.f32 %v1472_v17, %v2537_v18  ;;  %v1576_v18 = vld [vmem:[%s3339_s12 + $0x28] sm:$0xff]  ;;  %v1667_v17 = vmul.f32 %v3020_v58, %v1657_v9  ;;  %v1752_v28 = vadd.f32 %v1744_v24, %v1726_v19  ;;  %v3124_v24 = vld [vmem:[#allocation4 + $0x60] sm:$0xff] }
 0x2e2   : > { %1592 = vmatpush.msrb.mxu0 %v1576_v18  ;;  %v3116_v9 = vld [vmem:[#allocation4 + $0x41] sm:$0xff] }
 0x2e3   : > { %v2967_v27 = vmax.f32 %v1480_v20, 0.0  ;;  %v3046_v20 = vld [vmem:[%s3340_s13 + $0x5] ss:$0 sm:$0xff]  ;;  %v1675_v18 = vadd.f32 %v1667_v17, %v1641_v16 }
 0x2e4   : > { %v1447_v29 = vpop.f32.mrf.mxu3  ;;  %1593 = vmatpush.msrb.mxu0 %v1575_v32  ;;  %v1770_v32 = vmul.f32 %v3046_v20, %v1683_v23 }
 0x2e5   : > { %3385 = vst [vmem:[#allocation17_spill] sm:$0xff] %v2967_v27  ;;  %v1461_v31 = vmul.f32 %v2855_v33, %v1447_v29  ;;  %v1499_v33 = vsel %vm576_vm0, %v2924_v1, 0.0  ;;  %v1693_v29 = vmul.f32 %v3027_v0, %v1683_v23  ;;  %v3122_v23 = vld [vmem:[#allocation4 + $0x51] sm:$0xff] }
 0x2e6   : > { %1628 = vst.msk [vmem:[#allocation4 + $0x71] sm:$0xff] %vm576_vm0, %v2967_v27  ;;  %1594 = vmatpush.msrb.mxu0 %v1574_v37  ;;  %v1500_v44 = vadd.f32 %v1499_v33, %v1498_v42  ;;  %v1778_v37 = vadd.f32 %v1770_v32, %v1752_v28  ;;  %v3068_v33 = vld [vmem:[#allocation4 + $0x30] sm:$0xff]  ;;  %v1668_v42 = vmul.f32 %v3020_v58, %v1658_v34 }
 0x2e7   : > { %v1473_v36 = vadd.f32 %v2860_v10, %v1461_v31  ;;  %v1501_v10 = vsel %vm576_vm0, %v2967_v27, 0.0  ;;  %v3059_v31 = vld [vmem:[%s3341_s14] ss:$0 sm:$0xff]  ;;  %v1685_v28 = vld [vmem:[#allocation4 + $0x32] sm:$0xff] }
 0x2e8   : > { %1595 = vmatpush.msrb.mxu0 %v1573_v21  ;;  %v1502_v45 = vadd.f32 %v1501_v10, %v1500_v44  ;;  %v1642_v21 = vmul.f32 %v3015_v57, %v1632_v25  ;;  %v1684_v10 = vld [vmem:[#allocation4 + $0x22] sm:$0xff]  ;;  %v3106_v62 = vmul.f32 %v2228_v61, %v3059_v31  ;;  %v3110_v11 = vmul.f32 %v2229_v63, %v3059_v31  ;;  %v3163_v63 = vld [vmem:[#allocation4 + $0x52] sm:$0xff] }
 0x2e9   : > { %v1481_v41 = vadd.f32 %v2989_v40, %v1473_v36  ;;  %v1701_v36 = vadd.f32 %v1693_v29, %v1675_v18  ;;  %v3077_v44 = vld [vmem:[%s3340_s13 + $0x8] ss:$0 sm:$0xff]  ;;  %v1694_v2 = vmul.f32 %v3027_v0, %v1684_v10  ;;  %v1771_v17 = vmul.f32 %v3046_v20, %v1684_v10 }
 0x2ea   : > { %1596 = vmatpush.msrb.mxu0 %v1572_v43  ;;  %v1676_v14 = vadd.f32 %v1668_v42, %v1642_v21  ;;  %v1849_v19 = vmul.f32 %v3077_v44, %v1684_v10  ;;  %v3126_v25 = vld [vmem:[#allocation4 + $0x61] sm:$0xff]  ;;  %v1720_v29 = vmul.f32 %v3033_v12, %v3068_v33  ;;  %v1645_v42 = vmul.f32 %v3015_v57, %v3118_v13 }
 0x2eb   : > { %v2997_v4 = vmax.f32 %v1481_v41, 0.0  ;;  %v3070_v41 = vld [vmem:[#allocation4 + $0x31] sm:$0xff]  ;;  %v1727_v43 = vadd.f32 %v1719_v30, %v1701_v36  ;;  %v1644_v36 = vmul.f32 %v3015_v57, %v3114_v6  ;;  %v1671_v10 = vmul.f32 %v3020_v58, %v3122_v23  ;;  %v3161_v61 = vld [vmem:[#allocation4 + $0x42] sm:$0xff] }
 0x2ec   : > { %1597 = vmatpush.msrb.mxu0 %v1571_v5  ;;  %v2224_v5 = vld [vmem:[%s2457_s21] sm:$0xff] }
 0x2ed   : > { %3386 = vst [vmem:[#allocation18_spill] sm:$0xff] %v2997_v4  ;;  %v1503_v47 = vsel %vm576_vm0, %v2997_v4, 0.0  ;;  %v3102_v59 = vld [vmem:[#allocation4 + $0x71] sm:$0xff]  ;;  %v1679_v27 = vadd.f32 %v1671_v10, %v1645_v42  ;;  %v1747_v10 = vmul.f32 %v3039_v15, %v3116_v9 }
 0x2ee   : > { %1629 = vst.msk [vmem:[#allocation4 + $0x81] sm:$0xff] %vm576_vm0, %v2997_v4  ;;  %v1504_v48 = vadd.f32 %v1503_v47, %v1502_v45  ;;  %v3081_v45 = vmul.f32 %v2224_v5, %v3059_v31  ;;  %v2225_v47 = vld [vmem:[%s2457_s21 + $0x8] sm:$0xff]  ;;  %v1673_v32 = vmul.f32 %v3020_v58, %v3102_v59  ;;  %v1672_v5 = vmul.f32 %v3020_v58, %v3126_v25 }
 0x2f0   : > { %v1505_v49 = vrot.slane %v1504_v48, 4 }
 0x2f2   : > { %v1506_v50 = vadd.f32 %v1505_v49, %v1504_v48  ;;  %v3085_v48 = vmul.f32 %v2225_v47, %v3059_v31  ;;  %v2226_v49 = vld [vmem:[%s2457_s21 + $0x10] sm:$0xff]  ;;  %v1702_v47 = vadd.f32 %v1694_v2, %v1676_v14 }
 0x2f4   : > { %v1507_v7 = vrot.slane %v1506_v50, 2 }
 0x2f6   : > { %v1508_v52 = vadd.f32 %v1507_v7, %v1506_v50  ;;  %v3089_v50 = vmul.f32 %v2226_v49, %v3059_v31  ;;  %v1805_v7 = vadd.f32 %v1797_v35, %v1778_v37  ;;  %v1670_v37 = vmul.f32 %v3020_v58, %v3116_v9 }
 0x2f7   : > { %v1695_v49 = vmul.f32 %v3027_v0, %v1685_v28 }
 0x2f8   : > { %v1509_v53 = vrot.slane %v1508_v52, 1  ;;  %v1831_v18 = vadd.f32 %v1823_v3, %v1805_v7  ;;  %v1721_v7 = vmul.f32 %v3033_v12, %v3114_v6  ;;  %v1678_v4 = vadd.f32 %v1670_v37, %v1644_v36 }
 0x2f9   : > { %v1746_v36 = vmul.f32 %v3039_v15, %v3070_v41  ;;  %v1798_v37 = vmul.f32 %v3052_v26, %v3068_v33 }
 0x2fa   : > { %v1510_v8 = vadd.f32 %v1509_v53, %v1508_v52  ;;  %v2227_v52 = vld [vmem:[%s2457_s21 + $0x18] sm:$0xff]  ;;  %v3165_v3 = vadd.f32 %v1849_v19, %v1831_v18  ;;  %v1722_v19 = vmul.f32 %v3033_v12, %v3118_v13 }
 0x2fb   : > { %v3093_v53 = vmul.f32 %v2227_v52, %v3059_v31  ;;  %v3149_v52 = vld [vmem:[#allocation4 + $0x72] sm:$0xff] }
 0x2fc   : > { %2119 = vmatmul.msk.f32.vlgmr.msrb.gmra.mxu2 %vm576_vm0, %v1510_v8  ;;  %2120 = vmatmul.msk.f32.vlgmr.msrb.gmra.mxu3 %vm576_vm0, %v1510_v8  ;;  %v1745_v8 = vmul.f32 %v3039_v15, %v1658_v34  ;;  %v1699_v1 = vmul.f32 %v3027_v0, %v3149_v52 }
 0x2fe   : > { %v1753_v16 = vadd.f32 %v1745_v8, %v1727_v43  ;;  %v1646_v43 = vmul.f32 %v3015_v57, %v3124_v24  ;;  %v3151_v8 = vld [vmem:[#allocation4 + $0x80] sm:$0xff] }
 0x37f   : > { %v1539_v54 = vpop.f32.mrf.mxu2  ;;  %v1567_v55 = vpop.f32.mrf.mxu3 }
 0x380   : > { %v1570_v56 = vmul.f32 %v1567_v55, %v1539_v54  ;;  %v1643_v54 = vmul.f32 %v3015_v57, %v3068_v33  ;;  %v1669_v55 = vmul.f32 %v3020_v58, %v3070_v41  ;;  %v1779_v58 = vadd.f32 %v1771_v17, %v1753_v16 }
 0x381   : > { %v1697_v17 = vmul.f32 %v3027_v0, %v3163_v63  ;;  %v1824_v33 = vmul.f32 %v3066_v39, %v3070_v41  ;;  %v1794_v41 = vld [vmem:[#allocation4 + $0x90] sm:$0xff] }
 0x382   : > { %2121 = vmatmul.msk.f32.vlgmr.msrb.gmra.mxu0 %vm576_vm0, %v1570_v56  ;;  %v3100_v56 = vld [vmem:[#allocation4 + $0x70] sm:$0xff]  ;;  %v1677_v35 = vadd.f32 %v1669_v55, %v1643_v54 }
 0x383   : > { %v1647_v30 = vmul.f32 %v3015_v57, %v3100_v56  ;;  %v2230_v54 = vld [vmem:[%s2457_s21 + $0x30] sm:$0xff]  ;;  %v3159_v57 = vmul.f32 %v2989_v40, %v3059_v31  ;;  %v1725_v40 = vmul.f32 %v3033_v12, %v3151_v8 }
 0x384   : > { %v3155_v55 = vmul.f32 %v2230_v54, %v3059_v31  ;;  %v1703_v14 = vadd.f32 %v1695_v49, %v1677_v35  ;;  %v1680_v54 = vadd.f32 %v1672_v5, %v1646_v43  ;;  %v1696_v31 = vmul.f32 %v3027_v0, %v3161_v61  ;;  %v3191_v43 = vld [vmem:[#allocation4 + $0x81] sm:$0xff] }
 0x385   : > { %v1681_v2 = vadd.f32 %v1673_v32, %v1647_v30  ;;  %v1724_v32 = vmul.f32 %v3033_v12, %v3100_v56 }
 0x386   : > { %v1729_v16 = vadd.f32 %v1721_v7, %v1703_v14  ;;  %v1704_v42 = vadd.f32 %v1696_v31, %v1678_v4  ;;  %v1751_v4 = vmul.f32 %v3039_v15, %v3191_v43  ;;  %v1806_v31 = vadd.f32 %v1798_v37, %v1779_v58 }
 0x387   : > { %v1707_v30 = vadd.f32 %v1699_v1, %v1681_v2  ;;  %v1774_v37 = vmul.f32 %v3046_v20, %v3163_v63 }
 0x388   : > { %v1755_v7 = vadd.f32 %v1747_v10, %v1729_v16  ;;  %v1730_v2 = vadd.f32 %v1722_v19, %v1704_v42  ;;  %v1749_v16 = vmul.f32 %v3039_v15, %v3126_v25  ;;  %v1801_v42 = vmul.f32 %v3052_v26, %v3124_v24 }
 0x3ff   : > { %v1599_v34 = vpop.f32.mrf.mxu0 }
 0x400   : > { %v2122_v21 = vmul.f32 -1.442695, %v1599_v34  ;;  %v1728_v34 = vadd.f32 %v1720_v29, %v1702_v47  ;;  %v1723_v29 = vmul.f32 %v3033_v12, %v3124_v24  ;;  %v1733_v47 = vadd.f32 %v1725_v40, %v1707_v30  ;;  %v3208_v40 = vld [vmem:[#allocation4 + $0x82] sm:$0xff] }
 0x401   : > { %v1772_v12 = vmul.f32 %v3046_v20, %v1685_v28  ;;  %v1777_v58 = vmul.f32 %v3046_v20, %v3208_v40 }
 0x402   : > { %2219 = vpow2.f32 %v2122_v21  ;;  %v3167_v21 = vld [vmem:[#allocation4 + $0x62] sm:$0xff]  ;;  %v1754_v49 = vadd.f32 %v1746_v36, %v1728_v34  ;;  %v1773_v34 = vmul.f32 %v3046_v20, %v3161_v61  ;;  %v1759_v19 = vadd.f32 %v1751_v4, %v1733_v47  ;;  %v1820_v47 = vld [vmem:[#allocation4 + $0x91] sm:$0xff] }
 0x403   : > { %v1698_v18 = vmul.f32 %v3027_v0, %v3167_v21  ;;  %v1705_v0 = vadd.f32 %v1697_v17, %v1679_v27  ;;  %v3202_v27 = vmul.f32 %v3077_v44, %v1685_v28  ;;  %v1750_v17 = vmul.f32 %v3039_v15, %v3102_v59 }
 0x404   : > { %v1781_v28 = vadd.f32 %v1773_v34, %v1755_v7 }
 0x405   : > { %v1706_v5 = vadd.f32 %v1698_v18, %v1680_v54  ;;  %v1731_v14 = vadd.f32 %v1723_v29, %v1705_v0  ;;  %v1748_v54 = vmul.f32 %v3039_v15, %v3122_v23  ;;  %v1780_v18 = vadd.f32 %v1772_v12, %v1754_v49 }
 0x406   : > { %v1799_v29 = vmul.f32 %v3052_v26, %v3114_v6  ;;  %v1775_v15 = vmul.f32 %v3046_v20, %v3167_v21  ;;  %v1804_v6 = vmul.f32 %v3052_v26, %v1794_v41  ;;  %v1785_v0 = vadd.f32 %v1777_v58, %v1759_v19 }
 0x407   : > { %v1732_v60 = vadd.f32 %v1724_v32, %v1706_v5  ;;  %v1756_v30 = vadd.f32 %v1748_v54, %v1730_v2  ;;  %v1800_v32 = vmul.f32 %v3052_v26, %v3118_v13  ;;  %v1776_v13 = vmul.f32 %v3046_v20, %v3149_v52 }
 0x408   : > { %v2220_v35 = vpop.eup %2219  ;;  %v1803_v5 = vmul.f32 %v3052_v26, %v3151_v8  ;;  %v1832_v49 = vadd.f32 %v1824_v33, %v1806_v31  ;;  %v1825_v12 = vmul.f32 %v3066_v39, %v3116_v9  ;;  %v1807_v2 = vadd.f32 %v1799_v29, %v1780_v18  ;;  %v1846_v31 = vld [vmem:[#allocation4 + $0x92] sm:$0xff] }
 0x409   : > { %v3193_v1 = vadd.f32 1.0, %v2220_v35  ;;  %v1757_v35 = vadd.f32 %v1749_v16, %v1731_v14  ;;  %v1758_v36 = vadd.f32 %v1750_v17, %v1732_v60  ;;  %v1802_v60 = vmul.f32 %v3052_v26, %v3100_v56 }
 0x40a   : > { %v1782_v7 = vadd.f32 %v1774_v37, %v1756_v30  ;;  %v1808_v14 = vadd.f32 %v1800_v32, %v1781_v28  ;;  %v1826_v20 = vmul.f32 %v3066_v39, %v3122_v23  ;;  %v1830_v54 = vmul.f32 %v3066_v39, %v1820_v47 }
 0x40b   : > { %2221 = vrcp.f32 %v3193_v1  ;;  %v1783_v4 = vadd.f32 %v1775_v15, %v1757_v35  ;;  %v1784_v34 = vadd.f32 %v1776_v13, %v1758_v36  ;;  %v1812_v33 = vadd.f32 %v1804_v6, %v1785_v0 }
 0x40c   : > { %v1809_v56 = vadd.f32 %v1801_v42, %v1782_v7  ;;  %v1617_v9 = vand.u32 2147483648, %v3193_v1  ;;  %v1827_v17 = vmul.f32 %v3066_v39, %v3126_v25  ;;  %v1615_v41 = vand.u32 2147483647, %v3193_v1 }
 0x40d   : > { %v1810_v26 = vadd.f32 %v1802_v60, %v1783_v4  ;;  %v1811_v8 = vadd.f32 %v1803_v5, %v1784_v34  ;;  %v1833_v18 = vadd.f32 %v1825_v12, %v1807_v2  ;;  %v1834_v28 = vadd.f32 %v1826_v20, %v1808_v14 }
 0x40e   : > { %v1828_v23 = vmul.f32 %v3066_v39, %v3102_v59  ;;  %v1829_v29 = vmul.f32 %v3066_v39, %v3191_v43  ;;  %v1835_v30 = vadd.f32 %v1827_v17, %v1809_v56  ;;  %v1856_v32 = vmul.f32 %v3077_v44, %v1846_v31 }
 0x40f   : > { %vm1611_vm15 = vweird.f32 %v3193_v1  ;;  %v1838_v58 = vadd.f32 %v1830_v54, %v1812_v33  ;;  %v1618_v37 = vor.u32 1.1754944e-38, %v1617_v9  ;;  %v1851_v15 = vmul.f32 %v3077_v44, %v3161_v61  ;;  %v3387_v9 = vld [vmem:[#allocation15_spill] sm:$0xff] }
 0x410   : > { %v1836_v36 = vadd.f32 %v1828_v23, %v1810_v26  ;;  %v1837_v25 = vadd.f32 %v1829_v29, %v1811_v8  ;;  %v1852_v59 = vmul.f32 %v3077_v44, %v3163_v63  ;;  %vm1616_vm2 = vcmp.eq.f32.partialorder %v1615_v41, 8.507059e+37 }
 0x411   : > { %v2222_v10 = vpop.eup %2221  ;;  %v1853_v39 = vmul.f32 %v3077_v44, %v3167_v21  ;;  %v1854_v43 = vmul.f32 %v3077_v44, %v3149_v52  ;;  %v1858_v13 = vadd.f32 %v3202_v27, %v1832_v49  ;;  %v1859_v60 = vadd.f32 %v1851_v15, %v1833_v18  ;;  %v3389_v18 = vld [vmem:[#allocation17_spill] sm:$0xff] }
 0x412   : > { %v1607_v24 = vmul.f32 %v2222_v10, %v3193_v1  ;;  %vm1612_vm14 = vweird.f32 %v2222_v10  ;;  %v1855_v1 = vmul.f32 %v3077_v44, %v3208_v40  ;;  %v1860_v61 = vadd.f32 %v1852_v59, %v1834_v28  ;;  %v2217_v44 = vld [vmem:[%s3342_s15] ss:$0 sm:$0xff] }
 0x413   : > { %vm1613_vm1 = vmor %vm1611_vm15, %vm1612_vm14  ;;  %v1861_v5 = vadd.f32 %v1853_v39, %v1835_v30  ;;  %v1862_v63 = vadd.f32 %v1854_v43, %v1836_v36  ;;  %v1864_v47 = vadd.f32 %v1856_v32, %v1838_v58 }
 0x414   : > { %v1608_v16 = vsub.f32 1.0, %v1607_v24 }
 0x416   : > { %v1609_v19 = vmul.f32 %v2222_v10, %v1608_v16 }
 0x418   : > { %v1610_v35 = vadd.f32 %v2222_v10, %v1609_v19  ;;  %v3388_v19 = vld [vmem:[#allocation16_spill] sm:$0xff] }
 0x41a   : > { %v1614_v42 = vsel %vm1613_vm1, %v2222_v10, %v1610_v35  ;;  %v1863_v10 = vadd.f32 %v1855_v1, %v1837_v25 }
 0x41b   : > { %v1619_v6 = vsel %vm1616_vm2, %v1618_v37, %v1614_v42 }
 0x41c   : > { %v1865_v0 = vperm.slane %v1619_v6, 0 }
 0x41e   : > { %v1866_v12 = vmul.f32 %v1865_v0, %v3165_v3  ;;  %v1867_v21 = vmul.f32 %v1865_v0, %v1858_v13  ;;  %v1868_v7 = vmul.f32 %v1865_v0, %v1859_v60  ;;  %v1869_v52 = vmul.f32 %v1865_v0, %v1860_v61 }
 0x41f   : > { %v1870_v40 = vmul.f32 %v1865_v0, %v1861_v5  ;;  %v1871_v27 = vmul.f32 %v1865_v0, %v1862_v63  ;;  %v1872_v49 = vmul.f32 %v1865_v0, %v1863_v10  ;;  %v1873_v24 = vmul.f32 %v1865_v0, %v1864_v47 }
 0x420   : > { %v1886_v2 = vadd.f32 %v3081_v45, %v1866_v12  ;;  %v1887_v14 = vadd.f32 %v3085_v48, %v1867_v21  ;;  %v1888_v4 = vadd.f32 %v3089_v50, %v1868_v7  ;;  %v1889_v3 = vadd.f32 %v3093_v53, %v1869_v52  ;;  %v2218_v48 = vld [vmem:[%s3343_s16] ss:$0 sm:$0xff] }
 0x421   : > { %v1890_v34 = vadd.f32 %v3106_v62, %v1870_v40  ;;  %v1891_v20 = vadd.f32 %v3110_v11, %v1871_v27  ;;  %v1892_v56 = vadd.f32 %v3155_v55, %v1872_v49  ;;  %v1893_v54 = vadd.f32 %v3159_v57, %v1873_v24 }
 0x422   : > { %v1898_v16 = vmul.f32 %v2217_v44, %v1886_v2  ;;  %v1899_v26 = vmul.f32 %v2217_v44, %v1887_v14  ;;  %v1900_v45 = vmul.f32 %v2217_v44, %v1888_v4  ;;  %v1901_v8 = vmul.f32 %v2217_v44, %v1889_v3 }
 0x423   : > { %v1902_v50 = vmul.f32 %v2217_v44, %v1890_v34  ;;  %v1903_v53 = vmul.f32 %v2217_v44, %v1891_v20  ;;  %v1904_v33 = vmul.f32 %v2217_v44, %v1892_v56  ;;  %v1905_v62 = vmul.f32 %v2217_v44, %v1893_v54 }
 0x424   : > { %v1906_v11 = vadd.f32 %v1898_v16, %v2865_v38  ;;  %v1907_v55 = vadd.f32 %v1899_v26, %v2872_v22  ;;  %v1908_v57 = vadd.f32 %v1900_v45, %v2885_v46  ;;  %v1909_v31 = vadd.f32 %v1901_v8, %v2892_v51  ;;  %v3390_v38 = vld [vmem:[#allocation18_spill] sm:$0xff] }
 0x425   : > { %v1910_v17 = vadd.f32 %v1902_v50, %v3387_v9  ;;  %v1911_v41 = vadd.f32 %v1903_v53, %v3388_v19  ;;  %v1912_v28 = vadd.f32 %v1904_v33, %v3389_v18  ;;  %v1913_v32 = vadd.f32 %v1905_v62, %v3390_v38 }
 0x426   : > { %v1918_v23 = vadd.f32 %v2218_v48, %v1906_v11  ;;  %v1919_v29 = vadd.f32 %v2218_v48, %v1907_v55  ;;  %v1920_v30 = vadd.f32 %v2218_v48, %v1908_v57  ;;  %v1921_v22 = vadd.f32 %v2218_v48, %v1909_v31 }
 0x427   : > { %v1922_v35 = vadd.f32 %v2218_v48, %v1910_v17  ;;  %v1923_v46 = vadd.f32 %v2218_v48, %v1911_v41  ;;  %v1924_v51 = vadd.f32 %v2218_v48, %v1912_v28  ;;  %v1925_v36 = vadd.f32 %v2218_v48, %v1913_v32 }
 0x428   : > { %1926 = vst.msk [vmem:[%s541_s20] sm:$0xff] %vm576_vm0, %v1918_v23 }
 0x429   : > { %1927 = vst.msk [vmem:[%s541_s20 + $0x8] sm:$0xff] %vm576_vm0, %v1919_v29 }
 0x42a   : > { %1928 = vst.msk [vmem:[%s541_s20 + $0x10] sm:$0xff] %vm576_vm0, %v1920_v30 }
 0x42b   : > { %1929 = vst.msk [vmem:[%s541_s20 + $0x18] sm:$0xff] %vm576_vm0, %v1921_v22 }
 0x42c   : > { %1930 = vst.msk [vmem:[%s541_s20 + $0x20] sm:$0xff] %vm576_vm0, %v1922_v35 }
 0x42d   : > { %1931 = vst.msk [vmem:[%s541_s20 + $0x28] sm:$0xff] %vm576_vm0, %v1923_v46 }
 0x42e   : > { %1932 = vst.msk [vmem:[%s541_s20 + $0x30] sm:$0xff] %vm576_vm0, %v1924_v51 }
 0x42f   : > { %1933 = vst.msk [vmem:[%s541_s20 + $0x38] sm:$0xff] %vm576_vm0, %v1925_v36 }
 0x430   : > { %2258 = shalt.err (!%p2255_p3)
}
 0x431   : > { %s2303_s0 = smov 128   ;;  %s2304_s20 = smov 8  }
 0x432   : > { %2152 = dma.vmem_to_hbm [thread:$0]  (%p2433_p5), %s1948_s29, 1024, %s1950_s30, %s1935_s27, %s2303_s0, %s2303_s0, %s2304_s20  }
 0x433 PF: > { %s3392_s2 = sld [smem:[#allocation10_spill]] }
 0x434   : > { %s3393_s3 = sld [smem:[#allocation8_spill]] }
 0x439   : > { %p2158_p4 = scmp.ge.s32.totalorder %s3392_s2, 2 }
 0x43a   : > { %s1964_s24 = sand.u32 1, %s3393_s3  }
 0x43b   : > { %p2155_p7 = pnand %p2158_p4, %p2437_p6  ;;  %s1965_s19 = scalar_lea.sflag [#allocation6], %s1964_s24 }
 0x43d   : > { %p2156_p8 = pneg %p2155_p7 }
 0x43f   : > { %2276 = dma.done.wait (%p2156_p8), %s1965_s19, 1024  }
 0x440   : > { %2278 = vsyncadd (%p2156_p8), %s1965_s19, 4294966272  ;;  %s3395_s27 = sld [smem:[#allocation11_spill]]  ;;  %s3398_s24 = smov %s2285_s25 }
 0x441   : > { %s3396_s18 = sld [smem:[#allocation9_spill]] }
 0x442   : > { %s3397_s26 = sld [smem:[#allocation12_spill]] }
 0x446   : > { %p27_p9 = scmp.ge.s32.totalorder %s3395_s27, 4  }
 0x447   : > { %s3399_s25 = smov %s3396_s18 }
 0x448   :  { %29 = sbr.rel (!%p27_p9) target bundleno = 9 (0x9), region = 129 }
 0x44d   :  { %1971 = vsyncpa [#allocation6], 1 }
 0x44e   :  { %1973 = vsyncpa [#allocation6 + $0x1], 1 }

</bundles_post_ra>
